<compile_context>
chip_gen: v7x
topology: tpu7x:2x2x1
jax: 0.10.0
libtpu: 0.0.40
codegen_flags: <defaults>
</compile_context>

<pallas_src>
import functools

import jax
import jax.numpy as jnp
from jax.experimental import pallas as pl
from jax.experimental.pallas import tpu as pltpu


def _round_up(x, m):
    return (x + m - 1) // m * m


# ----------------------------------------------------------------------------
# Fused stem kernel: conv1(s2)+BN+ReLU -> conv2(s2)+BN+ReLU -> conv3(s1)+bias
# ----------------------------------------------------------------------------
def _stem_kernel(p1_ref, w1_ref, sh1_ref, w2_ref, sh2_ref, w3_ref, b3_ref,
                 ml_ref, mr_ref, o_ref, *, n_tok, w2_cols, c1, c2, pad):
    N, W2, PAD = n_tok, w2_cols, pad
    f32, bf16 = jnp.float32, jnp.bfloat16

    w1 = w1_ref[...]        # (K1p, C1) bf16, BN scale folded in
    sh1 = sh1_ref[...]      # (1, C1)  f32
    sh2 = sh2_ref[...]      # (1, C2)  f32
    ml = ml_ref[...]        # (N, 1)   f32   1.0 where j2 != 0
    mr = mr_ref[...]        # (N, 1)   f32   1.0 where j2 != W2-1

    # --- conv1 + BN + ReLU: one matmul per output-pixel parity phase --------
    # phase pq = 2*p + q holds conv1 outputs at rows 2*i2+p, cols 2*j2+q,
    # flattened as n = i2*W2 + j2, zero-padded with PAD rows front and back.
    zpad1 = jnp.zeros((PAD, c1), f32)
    a1_pad = []
    for pq in range(4):
        a = jnp.dot(p1_ref[0, pq], w1, preferred_element_type=f32)
        a = jnp.maximum(a + sh1, 0.0)
        a1_pad.append(jnp.concatenate([zpad1, a, zpad1], axis=0))

    # --- conv2 (stride 2) + BN + ReLU: 9 taps over the phase planes ---------
    # kernel tap index d in {0,1,2} (spatial offset d-1) maps to
    # (source parity par[d], phase-plane shift dlt[d]).
    par = (1, 0, 1)
    dlt = (-1, 0, 0)
    acc2 = jnp.zeros((N, c2), f32)
    for dh in range(3):
        for dw in range(3):
            pq = 2 * par[dh] + par[dw]
            off = PAD + dlt[dh] * W2 + dlt[dw]
            sl = a1_pad[pq][off:off + N, :]
            if dlt[dw] == -1:
                sl = sl * ml                      # left image edge -> zero
            acc2 = acc2 + jnp.dot(sl.astype(bf16), w2_ref[dh * 3 + dw],
                                  preferred_element_type=f32)
    a2 = jnp.maximum(acc2 + sh2, 0.0)

    # --- conv3 (stride 1) + bias: 9 taps in flattened-token space -----------
    zpad2 = jnp.zeros((PAD, c2), f32)
    a2_pad = jnp.concatenate([zpad2, a2, zpad2], axis=0)
    acc3 = jnp.zeros((N, o_ref.shape[-1]), f32)
    for dh in range(3):
        for dw in range(3):
            off = PAD + (dh - 1) * W2 + (dw - 1)
            sl = a2_pad[off:off + N, :]
            if dw == 0:
                sl = sl * ml
            elif dw == 2:
                sl = sl * mr
            acc3 = acc3 + jnp.dot(sl.astype(bf16), w3_ref[dh * 3 + dw],
                                  preferred_element_type=f32)
    o_ref[0] = acc3 + b3_ref[...]                 # (N, 128) lane-dense store


# ----------------------------------------------------------------------------
# Host-side glue
# ----------------------------------------------------------------------------
def _fold_bn(gamma, beta, mean, var, eps=1e-5):
    scale = gamma / jnp.sqrt(var + eps)
    shift = beta - mean * scale
    return scale, shift


def _phase_im2col(x_nhwc, H2, W2):
    """Conv1 (k=3, s=2, p=1) im2col patches grouped by output-pixel parity.

    Returns (B, 4, H2*W2, 9*Cin): phase pq = 2*p + q holds the patches of the
    conv1 output pixels (2*i2 + p, 2*j2 + q); feature order (kh, kw, cin).
    """
    B, H, W, C = x_nhwc.shape
    xp = jnp.pad(x_nhwc, ((0, 0), (1, 1), (1, 1), (0, 0)))
    phases = []
    for p in range(2):
        for q in range(2):
            taps = []
            for dh in range(3):
                for dw in range(3):
                    sl = xp[:, 2 * p + dh::4, 2 * q + dw::4, :]
                    taps.append(sl[:, :H2, :W2, :])
            ph = jnp.stack(taps, axis=3).reshape(B, H2 * W2, 9 * C)
            phases.append(ph)
    return jnp.stack(phases, axis=1)


def patch_embedding_forward(params, x_nhwc):
    """Fused PatchEmbedding ('stem' ReductionCell) forward."""
    B, H, W, _ = x_nhwc.shape
    assert H % 4 == 0 and W % 4 == 0, "fused stem assumes H, W divisible by 4"
    H2, W2 = H // 4, W // 4
    N = H2 * W2
    C1 = params["w1"].shape[1]
    C2 = params["w2"].shape[1]
    COUT_PAD = 128                        # lane-dense output slab
    K1 = params["w1"].shape[0]
    K1p = _round_up(K1, 8)                # pad contraction dim 27 -> 32
    PAD = _round_up(W2 + 1, 8)            # sublane-aligned zero-pad rows

    s1, sh1 = _fold_bn(**params["bn1"])
    s2, sh2 = _fold_bn(**params["bn2"])

    # conv1 im2col (only amplification of the 3-channel input; bf16 in HBM).
    patches = _phase_im2col(x_nhwc, H2, W2)
    patches = jnp.pad(patches, ((0, 0), (0, 0), (0, 0), (0, K1p - K1)))
    patches = patches.astype(jnp.bfloat16)

    # Fold BN scales into weights; pad; cast matmul operands to bf16.
    w1s = jnp.pad(params["w1"] * s1[None, :], ((0, K1p - K1), (0, 0)))
    w1s = w1s.astype(jnp.bfloat16)
    w2s = (params["w2"] * s2[None, :]).reshape(9, C1, C2).astype(jnp.bfloat16)
    w3p = jnp.pad(params["w3"].reshape(9, C2, C2),
                  ((0, 0), (0, 0), (0, COUT_PAD - C2))).astype(jnp.bfloat16)
    b3p = jnp.pad(params["b3"], (0, COUT_PAD - C2)).reshape(1, COUT_PAD)
    b3p = b3p.astype(jnp.float32)
    sh1 = sh1.reshape(1, C1).astype(jnp.float32)
    sh2 = sh2.reshape(1, C2).astype(jnp.float32)

    # Image-edge masks in flattened-token space.
    col = jnp.arange(N, dtype=jnp.int32) % W2
    mask_l = (col != 0).astype(jnp.float32).reshape(N, 1)
    mask_r = (col != W2 - 1).astype(jnp.float32).reshape(N, 1)

    kern = functools.partial(_stem_kernel, n_tok=N, w2_cols=W2,
                             c1=C1, c2=C2, pad=PAD)
    out = pl.pallas_call(
        kern,
        out_shape=jax.ShapeDtypeStruct((B, N, COUT_PAD), jnp.float32),
        grid_spec=pltpu.PrefetchScalarGridSpec(
            num_scalar_prefetch=0,
            grid=(B,),
            in_specs=[
                pl.BlockSpec((1, 4, N, K1p), lambda b: (b, 0, 0, 0)),   # patches
                pl.BlockSpec((K1p, C1), lambda b: (0, 0)),              # w1*s1
                pl.BlockSpec((1, C1), lambda b: (0, 0)),                # shift1
                pl.BlockSpec((9, C1, C2), lambda b: (0, 0, 0)),         # w2*s2
                pl.BlockSpec((1, C2), lambda b: (0, 0)),                # shift2
                pl.BlockSpec((9, C2, COUT_PAD), lambda b: (0, 0, 0)),   # w3 (padded)
                pl.BlockSpec((1, COUT_PAD), lambda b: (0, 0)),          # b3 (padded)
                pl.BlockSpec((N, 1), lambda b: (0, 0)),                 # mask_l
                pl.BlockSpec((N, 1), lambda b: (0, 0)),                 # mask_r
            ],
            out_specs=pl.BlockSpec((1, N, COUT_PAD), lambda b: (b, 0, 0)),
        ),
        compiler_params=pltpu.CompilerParams(
            dimension_semantics=("parallel",)),
    )(patches, w1s, sh1, w2s, sh2, w3p, b3p, mask_l, mask_r)

    tokens = out[:, :, :C2]               # drop lane padding -> (B, N, C2)
    return tokens, (H2, W2)


# ----------------------------------------------------------------------------
# Parameters
# ----------------------------------------------------------------------------
def init_patch_embedding(key, in_chans, inter_channel, out_channels):
    ks = jax.random.split(key, 14)

    def conv_w(k_, ksz, cin, cout):
        return 0.05 * jax.random.normal(k_, (ksz * ksz * cin, cout), jnp.float32)

    def bn(k0, k1, k2, k3, c):
        return dict(
            gamma=1.0 + 0.1 * jax.random.normal(k0, (c,), jnp.float32),
            beta=0.1 * jax.random.normal(k1, (c,), jnp.float32),
            mean=0.1 * jax.random.normal(k2, (c,), jnp.float32),
            var=jnp.abs(1.0 + 0.1 * jax.random.normal(k3, (c,), jnp.float32)),
        )

    return dict(
        w1=conv_w(ks[0], 3, in_chans, inter_channel),
        bn1=bn(ks[1], ks[2], ks[3], ks[4], inter_channel),
        w2=conv_w(ks[5], 3, inter_channel, out_channels),
        bn2=bn(ks[6], ks[7], ks[8], ks[9], out_channels),
        w3=conv_w(ks[10], 3, out_channels, out_channels),
        b3=0.1 * jax.random.normal(ks[11], (out_channels,), jnp.float32),
    )


def init_vitaev2(key, in_chans=3, token_dims=32):
    return dict(stage0=init_patch_embedding(
        key, in_chans, inter_channel=token_dims // 2, out_channels=token_dims))


# ----------------------------------------------------------------------------
# ViTAEv2 forward (stages=1, RC='stem', NC_depth=0, out_indices=(0,))
# ----------------------------------------------------------------------------
def vitaev2_forward(params, x_nchw):
    b = x_nchw.shape[0]
    x = jnp.transpose(x_nchw, (0, 2, 3, 1))       # NCHW -> NHWC for the kernel
    outs = []
    tokens, (h, w) = patch_embedding_forward(params["stage0"], x)
    out = jnp.transpose(tokens.reshape(b, h, w, -1), (0, 3, 1, 2))  # back to NCHW
    outs.append(out)
    return tuple(outs)


# ----------------------------------------------------------------------------
# Plain-JAX reference (f32, HIGHEST precision) for the correctness check
# ----------------------------------------------------------------------------
def _ref_conv(x, w_mat, k, s, p):
    cin, cout = x.shape[-1], w_mat.shape[-1]
    w = w_mat.reshape(k, k, cin, cout)
    return jax.lax.conv_general_dilated(
        x, w, (s, s), ((p, p), (p, p)),
        dimension_numbers=("NHWC", "HWIO", "NHWC"),
        precision=jax.lax.Precision.HIGHEST)


def _ref_forward(params, x_nchw):
    x = jnp.transpose(x_nchw, (0, 2, 3, 1))
    p = params["stage0"]
    s1, sh1 = _fold_bn(**p["bn1"])
    x = jnp.maximum(_ref_conv(x, p["w1"], 3, 2, 1) * s1 + sh1, 0.0)
    s2, sh2 = _fold_bn(**p["bn2"])
    x = jnp.maximum(_ref_conv(x, p["w2"], 3, 2, 1) * s2 + sh2, 0.0)
    x = _ref_conv(x, p["w3"], 3, 1, 1) + p["b3"]
    return jnp.transpose(x, (0, 3, 1, 2))


if __name__ == "__main__":
    root = jax.random.PRNGKey(0)
    k_x, k_p = jax.random.split(root)

    x = jax.random.normal(k_x, (2, 3, 16, 16), jnp.float32)   # NCHW, like PyTorch
    params = init_vitaev2(k_p, in_chans=3, token_dims=32)

    fwd = jax.jit(vitaev2_forward)
    outs = jax.block_until_ready(fwd(params, x))

    assert isinstance(outs, tuple) and len(outs) == 1
    assert outs[0].shape == (2, 32, 4, 4), outs[0].shape

    ref = jax.block_until_ready(_ref_forward(params, x))
    err = float(jnp.max(jnp.abs(outs[0] - ref)))
    assert err < 3e-2, f"max abs err {err}"   # bf16 matmul operands, f32 accumulate

    print("KERNEL_OK")
</pallas_src>

<mosaic_0001>
module attributes {stable_mosaic.version = 11 : i64} {
  func.func @_stem_kernel(%arg0: i32, %arg1: memref<1x4x16x32xbf16, #tpu.memory_space<vmem>>, %arg2: memref<32x16xbf16, #tpu.memory_space<vmem>>, %arg3: memref<1x16xf32, #tpu.memory_space<vmem>>, %arg4: memref<9x16x32xbf16, #tpu.memory_space<vmem>>, %arg5: memref<1x32xf32, #tpu.memory_space<vmem>>, %arg6: memref<9x32x128xbf16, #tpu.memory_space<vmem>>, %arg7: memref<1x128xf32, #tpu.memory_space<vmem>>, %arg8: memref<16x1xf32, #tpu.memory_space<vmem>>, %arg9: memref<16x1xf32, #tpu.memory_space<vmem>>, %arg10: memref<1x16x128xf32, #tpu.memory_space<vmem>>) attributes {dimension_semantics = [#tpu.dimension_semantics<parallel>], iteration_bounds = array<i64: 2>, scalar_prefetch = 0 : i64, scratch_operands = 0 : i64, tpu.core_type = #tpu.core_type<tc>, window_params = [{transform_indices = @transform_0, window_bounds = array<i64: 1, 4, 16, 32>}, {pipeline_mode = #tpu.pipeline_mode<synchronous>, transform_indices = @transform_1, window_bounds = array<i64: 32, 16>}, {pipeline_mode = #tpu.pipeline_mode<synchronous>, transform_indices = @transform_2, window_bounds = array<i64: 1, 16>}, {pipeline_mode = #tpu.pipeline_mode<synchronous>, transform_indices = @transform_3, window_bounds = array<i64: 9, 16, 32>}, {pipeline_mode = #tpu.pipeline_mode<synchronous>, transform_indices = @transform_4, window_bounds = array<i64: 1, 32>}, {pipeline_mode = #tpu.pipeline_mode<synchronous>, transform_indices = @transform_5, window_bounds = array<i64: 9, 32, 128>}, {pipeline_mode = #tpu.pipeline_mode<synchronous>, transform_indices = @transform_6, window_bounds = array<i64: 1, 128>}, {pipeline_mode = #tpu.pipeline_mode<synchronous>, transform_indices = @transform_7, window_bounds = array<i64: 16, 1>}, {pipeline_mode = #tpu.pipeline_mode<synchronous>, transform_indices = @transform_8, window_bounds = array<i64: 16, 1>}, {transform_indices = @transform_9, window_bounds = array<i64: 1, 16, 128>}]} {
    %c0 = arith.constant 0 : index
    %c0_0 = arith.constant 0 : index
    %0 = vector.load %arg2[%c0, %c0_0] : memref<32x16xbf16, #tpu.memory_space<vmem>>, vector<32x16xbf16>
    %c0_1 = arith.constant 0 : index
    %c0_2 = arith.constant 0 : index
    %1 = vector.load %arg3[%c0_1, %c0_2] : memref<1x16xf32, #tpu.memory_space<vmem>>, vector<1x16xf32>
    %c0_3 = arith.constant 0 : index
    %c0_4 = arith.constant 0 : index
    %2 = vector.load %arg5[%c0_3, %c0_4] : memref<1x32xf32, #tpu.memory_space<vmem>>, vector<1x32xf32>
    %c0_5 = arith.constant 0 : index
    %c0_6 = arith.constant 0 : index
    %3 = vector.load %arg8[%c0_5, %c0_6] : memref<16x1xf32, #tpu.memory_space<vmem>>, vector<16x1xf32>
    %c0_7 = arith.constant 0 : index
    %c0_8 = arith.constant 0 : index
    %4 = vector.load %arg9[%c0_7, %c0_8] : memref<16x1xf32, #tpu.memory_space<vmem>>, vector<16x1xf32>
    %cst = arith.constant 0.000000e+00 : f32
    %5 = vector.broadcast %cst : f32 to vector<8x16xf32>
    %c0_9 = arith.constant 0 : index
    %c0_10 = arith.constant 0 : index
    %c0_11 = arith.constant 0 : index
    %c0_12 = arith.constant 0 : index
    %6 = vector.load %arg1[%c0_9, %c0_10, %c0_11, %c0_12] : memref<1x4x16x32xbf16, #tpu.memory_space<vmem>>, vector<1x1x16x32xbf16>
    %7 = vector.shape_cast %6 : vector<1x1x16x32xbf16> to vector<16x32xbf16>
    %cst_13 = arith.constant dense<0.000000e+00> : vector<16x16xf32>
    %8 = tpu.matmul %7, %0, %cst_13 {dimension_numbers = #tpu.dot_dimension_numbers<[1], [0], [0], [1], [0, 0, 1, 1], [], []>} : vector<16x32xbf16>, vector<32x16xbf16>, vector<16x16xf32> -> vector<16x16xf32>
    %9 = vector.broadcast %1 : vector<1x16xf32> to vector<16x16xf32>
    %10 = arith.addf %8, %9 : vector<16x16xf32>
    %cst_14 = arith.constant 0.000000e+00 : f32
    %11 = vector.broadcast %cst_14 : f32 to vector<16x16xf32>
    %12 = arith.maximumf %10, %11 : vector<16x16xf32>
    %13 = tpu.concatenate %5, %12, %5 in 0 : vector<8x16xf32>, vector<16x16xf32>, vector<8x16xf32> -> vector<32x16xf32>
    %c0_15 = arith.constant 0 : index
    %c1 = arith.constant 1 : index
    %c0_16 = arith.constant 0 : index
    %c0_17 = arith.constant 0 : index
    %14 = vector.load %arg1[%c0_15, %c1, %c0_16, %c0_17] : memref<1x4x16x32xbf16, #tpu.memory_space<vmem>>, vector<1x1x16x32xbf16>
    %15 = vector.shape_cast %14 : vector<1x1x16x32xbf16> to vector<16x32xbf16>
    %cst_18 = arith.constant dense<0.000000e+00> : vector<16x16xf32>
    %16 = tpu.matmul %15, %0, %cst_18 {dimension_numbers = #tpu.dot_dimension_numbers<[1], [0], [0], [1], [0, 0, 1, 1], [], []>} : vector<16x32xbf16>, vector<32x16xbf16>, vector<16x16xf32> -> vector<16x16xf32>
    %17 = vector.broadcast %1 : vector<1x16xf32> to vector<16x16xf32>
    %18 = arith.addf %16, %17 : vector<16x16xf32>
    %cst_19 = arith.constant 0.000000e+00 : f32
    %19 = vector.broadcast %cst_19 : f32 to vector<16x16xf32>
    %20 = arith.maximumf %18, %19 : vector<16x16xf32>
    %21 = tpu.concatenate %5, %20, %5 in 0 : vector<8x16xf32>, vector<16x16xf32>, vector<8x16xf32> -> vector<32x16xf32>
    %c0_20 = arith.constant 0 : index
    %c2 = arith.constant 2 : index
    %c0_21 = arith.constant 0 : index
    %c0_22 = arith.constant 0 : index
    %22 = vector.load %arg1[%c0_20, %c2, %c0_21, %c0_22] : memref<1x4x16x32xbf16, #tpu.memory_space<vmem>>, vector<1x1x16x32xbf16>
    %23 = vector.shape_cast %22 : vector<1x1x16x32xbf16> to vector<16x32xbf16>
    %cst_23 = arith.constant dense<0.000000e+00> : vector<16x16xf32>
    %24 = tpu.matmul %23, %0, %cst_23 {dimension_numbers = #tpu.dot_dimension_numbers<[1], [0], [0], [1], [0, 0, 1, 1], [], []>} : vector<16x32xbf16>, vector<32x16xbf16>, vector<16x16xf32> -> vector<16x16xf32>
    %25 = vector.broadcast %1 : vector<1x16xf32> to vector<16x16xf32>
    %26 = arith.addf %24, %25 : vector<16x16xf32>
    %cst_24 = arith.constant 0.000000e+00 : f32
    %27 = vector.broadcast %cst_24 : f32 to vector<16x16xf32>
    %28 = arith.maximumf %26, %27 : vector<16x16xf32>
    %29 = tpu.concatenate %5, %28, %5 in 0 : vector<8x16xf32>, vector<16x16xf32>, vector<8x16xf32> -> vector<32x16xf32>
    %c0_25 = arith.constant 0 : index
    %c3 = arith.constant 3 : index
    %c0_26 = arith.constant 0 : index
    %c0_27 = arith.constant 0 : index
    %30 = vector.load %arg1[%c0_25, %c3, %c0_26, %c0_27] : memref<1x4x16x32xbf16, #tpu.memory_space<vmem>>, vector<1x1x16x32xbf16>
    %31 = vector.shape_cast %30 : vector<1x1x16x32xbf16> to vector<16x32xbf16>
    %cst_28 = arith.constant dense<0.000000e+00> : vector<16x16xf32>
    %32 = tpu.matmul %31, %0, %cst_28 {dimension_numbers = #tpu.dot_dimension_numbers<[1], [0], [0], [1], [0, 0, 1, 1], [], []>} : vector<16x32xbf16>, vector<32x16xbf16>, vector<16x16xf32> -> vector<16x16xf32>
    %33 = vector.broadcast %1 : vector<1x16xf32> to vector<16x16xf32>
    %34 = arith.addf %32, %33 : vector<16x16xf32>
    %cst_29 = arith.constant 0.000000e+00 : f32
    %35 = vector.broadcast %cst_29 : f32 to vector<16x16xf32>
    %36 = arith.maximumf %34, %35 : vector<16x16xf32>
    %37 = tpu.concatenate %5, %36, %5 in 0 : vector<8x16xf32>, vector<16x16xf32>, vector<8x16xf32> -> vector<32x16xf32>
    %cst_30 = arith.constant 0.000000e+00 : f32
    %38 = vector.broadcast %cst_30 : f32 to vector<16x32xf32>
    %39 = vector.extract_strided_slice %37 {offsets = [3, 0], sizes = [16, 16], strides = [1, 1]} : vector<32x16xf32> to vector<16x16xf32>
    %40 = vector.broadcast %3 : vector<16x1xf32> to vector<16x16xf32>
    %41 = arith.mulf %39, %40 : vector<16x16xf32>
    %42 = arith.truncf %41 : vector<16x16xf32> to vector<16x16xbf16>
    %c0_31 = arith.constant 0 : index
    %c0_32 = arith.constant 0 : index
    %c0_33 = arith.constant 0 : index
    %43 = vector.load %arg4[%c0_31, %c0_32, %c0_33] : memref<9x16x32xbf16, #tpu.memory_space<vmem>>, vector<1x16x32xbf16>
    %44 = vector.shape_cast %43 : vector<1x16x32xbf16> to vector<16x32xbf16>
    %cst_34 = arith.constant dense<0.000000e+00> : vector<16x32xf32>
    %45 = tpu.matmul %42, %44, %cst_34 {dimension_numbers = #tpu.dot_dimension_numbers<[1], [0], [0], [1], [0, 0, 1, 1], [], []>} : vector<16x16xbf16>, vector<16x32xbf16>, vector<16x32xf32> -> vector<16x32xf32>
    %46 = arith.addf %38, %45 : vector<16x32xf32>
    %47 = vector.extract_strided_slice %29 {offsets = [4, 0], sizes = [16, 16], strides = [1, 1]} : vector<32x16xf32> to vector<16x16xf32>
    %48 = arith.truncf %47 : vector<16x16xf32> to vector<16x16xbf16>
    %c1_35 = arith.constant 1 : index
    %c0_36 = arith.constant 0 : index
    %c0_37 = arith.constant 0 : index
    %49 = vector.load %arg4[%c1_35, %c0_36, %c0_37] : memref<9x16x32xbf16, #tpu.memory_space<vmem>>, vector<1x16x32xbf16>
    %50 = vector.shape_cast %49 : vector<1x16x32xbf16> to vector<16x32xbf16>
    %cst_38 = arith.constant dense<0.000000e+00> : vector<16x32xf32>
    %51 = tpu.matmul %48, %50, %cst_38 {dimension_numbers = #tpu.dot_dimension_numbers<[1], [0], [0], [1], [0, 0, 1, 1], [], []>} : vector<16x16xbf16>, vector<16x32xbf16>, vector<16x32xf32> -> vector<16x32xf32>
    %52 = arith.addf %46, %51 : vector<16x32xf32>
    %53 = vector.extract_strided_slice %37 {offsets = [4, 0], sizes = [16, 16], strides = [1, 1]} : vector<32x16xf32> to vector<16x16xf32>
    %54 = arith.truncf %53 : vector<16x16xf32> to vector<16x16xbf16>
    %c2_39 = arith.constant 2 : index
    %c0_40 = arith.constant 0 : index
    %c0_41 = arith.constant 0 : index
    %55 = vector.load %arg4[%c2_39, %c0_40, %c0_41] : memref<9x16x32xbf16, #tpu.memory_space<vmem>>, vector<1x16x32xbf16>
    %56 = vector.shape_cast %55 : vector<1x16x32xbf16> to vector<16x32xbf16>
    %cst_42 = arith.constant dense<0.000000e+00> : vector<16x32xf32>
    %57 = tpu.matmul %54, %56, %cst_42 {dimension_numbers = #tpu.dot_dimension_numbers<[1], [0], [0], [1], [0, 0, 1, 1], [], []>} : vector<16x16xbf16>, vector<16x32xbf16>, vector<16x32xf32> -> vector<16x32xf32>
    %58 = arith.addf %52, %57 : vector<16x32xf32>
    %59 = vector.extract_strided_slice %21 {offsets = [7, 0], sizes = [16, 16], strides = [1, 1]} : vector<32x16xf32> to vector<16x16xf32>
    %60 = vector.broadcast %3 : vector<16x1xf32> to vector<16x16xf32>
    %61 = arith.mulf %59, %60 : vector<16x16xf32>
    %62 = arith.truncf %61 : vector<16x16xf32> to vector<16x16xbf16>
    %c3_43 = arith.constant 3 : index
    %c0_44 = arith.constant 0 : index
    %c0_45 = arith.constant 0 : index
    %63 = vector.load %arg4[%c3_43, %c0_44, %c0_45] : memref<9x16x32xbf16, #tpu.memory_space<vmem>>, vector<1x16x32xbf16>
    %64 = vector.shape_cast %63 : vector<1x16x32xbf16> to vector<16x32xbf16>
    %cst_46 = arith.constant dense<0.000000e+00> : vector<16x32xf32>
    %65 = tpu.matmul %62, %64, %cst_46 {dimension_numbers = #tpu.dot_dimension_numbers<[1], [0], [0], [1], [0, 0, 1, 1], [], []>} : vector<16x16xbf16>, vector<16x32xbf16>, vector<16x32xf32> -> vector<16x32xf32>
    %66 = arith.addf %58, %65 : vector<16x32xf32>
    %67 = vector.extract_strided_slice %13 {offsets = [8, 0], sizes = [16, 16], strides = [1, 1]} : vector<32x16xf32> to vector<16x16xf32>
    %68 = arith.truncf %67 : vector<16x16xf32> to vector<16x16xbf16>
    %c4 = arith.constant 4 : index
    %c0_47 = arith.constant 0 : index
    %c0_48 = arith.constant 0 : index
    %69 = vector.load %arg4[%c4, %c0_47, %c0_48] : memref<9x16x32xbf16, #tpu.memory_space<vmem>>, vector<1x16x32xbf16>
    %70 = vector.shape_cast %69 : vector<1x16x32xbf16> to vector<16x32xbf16>
    %cst_49 = arith.constant dense<0.000000e+00> : vector<16x32xf32>
    %71 = tpu.matmul %68, %70, %cst_49 {dimension_numbers = #tpu.dot_dimension_numbers<[1], [0], [0], [1], [0, 0, 1, 1], [], []>} : vector<16x16xbf16>, vector<16x32xbf16>, vector<16x32xf32> -> vector<16x32xf32>
    %72 = arith.addf %66, %71 : vector<16x32xf32>
    %73 = vector.extract_strided_slice %21 {offsets = [8, 0], sizes = [16, 16], strides = [1, 1]} : vector<32x16xf32> to vector<16x16xf32>
    %74 = arith.truncf %73 : vector<16x16xf32> to vector<16x16xbf16>
    %c5 = arith.constant 5 : index
    %c0_50 = arith.constant 0 : index
    %c0_51 = arith.constant 0 : index
    %75 = vector.load %arg4[%c5, %c0_50, %c0_51] : memref<9x16x32xbf16, #tpu.memory_space<vmem>>, vector<1x16x32xbf16>
    %76 = vector.shape_cast %75 : vector<1x16x32xbf16> to vector<16x32xbf16>
    %cst_52 = arith.constant dense<0.000000e+00> : vector<16x32xf32>
    %77 = tpu.matmul %74, %76, %cst_52 {dimension_numbers = #tpu.dot_dimension_numbers<[1], [0], [0], [1], [0, 0, 1, 1], [], []>} : vector<16x16xbf16>, vector<16x32xbf16>, vector<16x32xf32> -> vector<16x32xf32>
    %78 = arith.addf %72, %77 : vector<16x32xf32>
    %79 = vector.extract_strided_slice %37 {offsets = [7, 0], sizes = [16, 16], strides = [1, 1]} : vector<32x16xf32> to vector<16x16xf32>
    %80 = vector.broadcast %3 : vector<16x1xf32> to vector<16x16xf32>
    %81 = arith.mulf %79, %80 : vector<16x16xf32>
    %82 = arith.truncf %81 : vector<16x16xf32> to vector<16x16xbf16>
    %c6 = arith.constant 6 : index
    %c0_53 = arith.constant 0 : index
    %c0_54 = arith.constant 0 : index
    %83 = vector.load %arg4[%c6, %c0_53, %c0_54] : memref<9x16x32xbf16, #tpu.memory_space<vmem>>, vector<1x16x32xbf16>
    %84 = vector.shape_cast %83 : vector<1x16x32xbf16> to vector<16x32xbf16>
    %cst_55 = arith.constant dense<0.000000e+00> : vector<16x32xf32>
    %85 = tpu.matmul %82, %84, %cst_55 {dimension_numbers = #tpu.dot_dimension_numbers<[1], [0], [0], [1], [0, 0, 1, 1], [], []>} : vector<16x16xbf16>, vector<16x32xbf16>, vector<16x32xf32> -> vector<16x32xf32>
    %86 = arith.addf %78, %85 : vector<16x32xf32>
    %87 = vector.extract_strided_slice %29 {offsets = [8, 0], sizes = [16, 16], strides = [1, 1]} : vector<32x16xf32> to vector<16x16xf32>
    %88 = arith.truncf %87 : vector<16x16xf32> to vector<16x16xbf16>
    %c7 = arith.constant 7 : index
    %c0_56 = arith.constant 0 : index
    %c0_57 = arith.constant 0 : index
    %89 = vector.load %arg4[%c7, %c0_56, %c0_57] : memref<9x16x32xbf16, #tpu.memory_space<vmem>>, vector<1x16x32xbf16>
    %90 = vector.shape_cast %89 : vector<1x16x32xbf16> to vector<16x32xbf16>
    %cst_58 = arith.constant dense<0.000000e+00> : vector<16x32xf32>
    %91 = tpu.matmul %88, %90, %cst_58 {dimension_numbers = #tpu.dot_dimension_numbers<[1], [0], [0], [1], [0, 0, 1, 1], [], []>} : vector<16x16xbf16>, vector<16x32xbf16>, vector<16x32xf32> -> vector<16x32xf32>
    %92 = arith.addf %86, %91 : vector<16x32xf32>
    %93 = vector.extract_strided_slice %37 {offsets = [8, 0], sizes = [16, 16], strides = [1, 1]} : vector<32x16xf32> to vector<16x16xf32>
    %94 = arith.truncf %93 : vector<16x16xf32> to vector<16x16xbf16>
    %c8 = arith.constant 8 : index
    %c0_59 = arith.constant 0 : index
    %c0_60 = arith.constant 0 : index
    %95 = vector.load %arg4[%c8, %c0_59, %c0_60] : memref<9x16x32xbf16, #tpu.memory_space<vmem>>, vector<1x16x32xbf16>
    %96 = vector.shape_cast %95 : vector<1x16x32xbf16> to vector<16x32xbf16>
    %cst_61 = arith.constant dense<0.000000e+00> : vector<16x32xf32>
    %97 = tpu.matmul %94, %96, %cst_61 {dimension_numbers = #tpu.dot_dimension_numbers<[1], [0], [0], [1], [0, 0, 1, 1], [], []>} : vector<16x16xbf16>, vector<16x32xbf16>, vector<16x32xf32> -> vector<16x32xf32>
    %98 = arith.addf %92, %97 : vector<16x32xf32>
    %99 = vector.broadcast %2 : vector<1x32xf32> to vector<16x32xf32>
    %100 = arith.addf %98, %99 : vector<16x32xf32>
    %cst_62 = arith.constant 0.000000e+00 : f32
    %101 = vector.broadcast %cst_62 : f32 to vector<16x32xf32>
    %102 = arith.maximumf %100, %101 : vector<16x32xf32>
    %cst_63 = arith.constant 0.000000e+00 : f32
    %103 = vector.broadcast %cst_63 : f32 to vector<8x32xf32>
    %104 = tpu.concatenate %103, %102, %103 in 0 : vector<8x32xf32>, vector<16x32xf32>, vector<8x32xf32> -> vector<32x32xf32>
    %cst_64 = arith.constant 0.000000e+00 : f32
    %105 = vector.broadcast %cst_64 : f32 to vector<16x128xf32>
    %106 = vector.extract_strided_slice %104 {offsets = [3, 0], sizes = [16, 32], strides = [1, 1]} : vector<32x32xf32> to vector<16x32xf32>
    %107 = vector.broadcast %3 : vector<16x1xf32> to vector<16x32xf32>
    %108 = arith.mulf %106, %107 : vector<16x32xf32>
    %109 = arith.truncf %108 : vector<16x32xf32> to vector<16x32xbf16>
    %c0_65 = arith.constant 0 : index
    %c0_66 = arith.constant 0 : index
    %c0_67 = arith.constant 0 : index
    %110 = vector.load %arg6[%c0_65, %c0_66, %c0_67] : memref<9x32x128xbf16, #tpu.memory_space<vmem>>, vector<1x32x128xbf16>
    %111 = vector.shape_cast %110 : vector<1x32x128xbf16> to vector<32x128xbf16>
    %cst_68 = arith.constant dense<0.000000e+00> : vector<16x128xf32>
    %112 = tpu.matmul %109, %111, %cst_68 {dimension_numbers = #tpu.dot_dimension_numbers<[1], [0], [0], [1], [0, 0, 1, 1], [], []>} : vector<16x32xbf16>, vector<32x128xbf16>, vector<16x128xf32> -> vector<16x128xf32>
    %113 = arith.addf %105, %112 : vector<16x128xf32>
    %114 = vector.extract_strided_slice %104 {offsets = [4, 0], sizes = [16, 32], strides = [1, 1]} : vector<32x32xf32> to vector<16x32xf32>
    %115 = arith.truncf %114 : vector<16x32xf32> to vector<16x32xbf16>
    %c1_69 = arith.constant 1 : index
    %c0_70 = arith.constant 0 : index
    %c0_71 = arith.constant 0 : index
    %116 = vector.load %arg6[%c1_69, %c0_70, %c0_71] : memref<9x32x128xbf16, #tpu.memory_space<vmem>>, vector<1x32x128xbf16>
    %117 = vector.shape_cast %116 : vector<1x32x128xbf16> to vector<32x128xbf16>
    %cst_72 = arith.constant dense<0.000000e+00> : vector<16x128xf32>
    %118 = tpu.matmul %115, %117, %cst_72 {dimension_numbers = #tpu.dot_dimension_numbers<[1], [0], [0], [1], [0, 0, 1, 1], [], []>} : vector<16x32xbf16>, vector<32x128xbf16>, vector<16x128xf32> -> vector<16x128xf32>
    %119 = arith.addf %113, %118 : vector<16x128xf32>
    %120 = vector.extract_strided_slice %104 {offsets = [5, 0], sizes = [16, 32], strides = [1, 1]} : vector<32x32xf32> to vector<16x32xf32>
    %121 = vector.broadcast %4 : vector<16x1xf32> to vector<16x32xf32>
    %122 = arith.mulf %120, %121 : vector<16x32xf32>
    %123 = arith.truncf %122 : vector<16x32xf32> to vector<16x32xbf16>
    %c2_73 = arith.constant 2 : index
    %c0_74 = arith.constant 0 : index
    %c0_75 = arith.constant 0 : index
    %124 = vector.load %arg6[%c2_73, %c0_74, %c0_75] : memref<9x32x128xbf16, #tpu.memory_space<vmem>>, vector<1x32x128xbf16>
    %125 = vector.shape_cast %124 : vector<1x32x128xbf16> to vector<32x128xbf16>
    %cst_76 = arith.constant dense<0.000000e+00> : vector<16x128xf32>
    %126 = tpu.matmul %123, %125, %cst_76 {dimension_numbers = #tpu.dot_dimension_numbers<[1], [0], [0], [1], [0, 0, 1, 1], [], []>} : vector<16x32xbf16>, vector<32x128xbf16>, vector<16x128xf32> -> vector<16x128xf32>
    %127 = arith.addf %119, %126 : vector<16x128xf32>
    %128 = vector.extract_strided_slice %104 {offsets = [7, 0], sizes = [16, 32], strides = [1, 1]} : vector<32x32xf32> to vector<16x32xf32>
    %129 = vector.broadcast %3 : vector<16x1xf32> to vector<16x32xf32>
    %130 = arith.mulf %128, %129 : vector<16x32xf32>
    %131 = arith.truncf %130 : vector<16x32xf32> to vector<16x32xbf16>
    %c3_77 = arith.constant 3 : index
    %c0_78 = arith.constant 0 : index
    %c0_79 = arith.constant 0 : index
    %132 = vector.load %arg6[%c3_77, %c0_78, %c0_79] : memref<9x32x128xbf16, #tpu.memory_space<vmem>>, vector<1x32x128xbf16>
    %133 = vector.shape_cast %132 : vector<1x32x128xbf16> to vector<32x128xbf16>
    %cst_80 = arith.constant dense<0.000000e+00> : vector<16x128xf32>
    %134 = tpu.matmul %131, %133, %cst_80 {dimension_numbers = #tpu.dot_dimension_numbers<[1], [0], [0], [1], [0, 0, 1, 1], [], []>} : vector<16x32xbf16>, vector<32x128xbf16>, vector<16x128xf32> -> vector<16x128xf32>
    %135 = arith.addf %127, %134 : vector<16x128xf32>
    %136 = vector.extract_strided_slice %104 {offsets = [8, 0], sizes = [16, 32], strides = [1, 1]} : vector<32x32xf32> to vector<16x32xf32>
    %137 = arith.truncf %136 : vector<16x32xf32> to vector<16x32xbf16>
    %c4_81 = arith.constant 4 : index
    %c0_82 = arith.constant 0 : index
    %c0_83 = arith.constant 0 : index
    %138 = vector.load %arg6[%c4_81, %c0_82, %c0_83] : memref<9x32x128xbf16, #tpu.memory_space<vmem>>, vector<1x32x128xbf16>
    %139 = vector.shape_cast %138 : vector<1x32x128xbf16> to vector<32x128xbf16>
    %cst_84 = arith.constant dense<0.000000e+00> : vector<16x128xf32>
    %140 = tpu.matmul %137, %139, %cst_84 {dimension_numbers = #tpu.dot_dimension_numbers<[1], [0], [0], [1], [0, 0, 1, 1], [], []>} : vector<16x32xbf16>, vector<32x128xbf16>, vector<16x128xf32> -> vector<16x128xf32>
    %141 = arith.addf %135, %140 : vector<16x128xf32>
    %142 = vector.extract_strided_slice %104 {offsets = [9, 0], sizes = [16, 32], strides = [1, 1]} : vector<32x32xf32> to vector<16x32xf32>
    %143 = vector.broadcast %4 : vector<16x1xf32> to vector<16x32xf32>
    %144 = arith.mulf %142, %143 : vector<16x32xf32>
    %145 = arith.truncf %144 : vector<16x32xf32> to vector<16x32xbf16>
    %c5_85 = arith.constant 5 : index
    %c0_86 = arith.constant 0 : index
    %c0_87 = arith.constant 0 : index
    %146 = vector.load %arg6[%c5_85, %c0_86, %c0_87] : memref<9x32x128xbf16, #tpu.memory_space<vmem>>, vector<1x32x128xbf16>
    %147 = vector.shape_cast %146 : vector<1x32x128xbf16> to vector<32x128xbf16>
    %cst_88 = arith.constant dense<0.000000e+00> : vector<16x128xf32>
    %148 = tpu.matmul %145, %147, %cst_88 {dimension_numbers = #tpu.dot_dimension_numbers<[1], [0], [0], [1], [0, 0, 1, 1], [], []>} : vector<16x32xbf16>, vector<32x128xbf16>, vector<16x128xf32> -> vector<16x128xf32>
    %149 = arith.addf %141, %148 : vector<16x128xf32>
    %150 = vector.extract_strided_slice %104 {offsets = [11, 0], sizes = [16, 32], strides = [1, 1]} : vector<32x32xf32> to vector<16x32xf32>
    %151 = vector.broadcast %3 : vector<16x1xf32> to vector<16x32xf32>
    %152 = arith.mulf %150, %151 : vector<16x32xf32>
    %153 = arith.truncf %152 : vector<16x32xf32> to vector<16x32xbf16>
    %c6_89 = arith.constant 6 : index
    %c0_90 = arith.constant 0 : index
    %c0_91 = arith.constant 0 : index
    %154 = vector.load %arg6[%c6_89, %c0_90, %c0_91] : memref<9x32x128xbf16, #tpu.memory_space<vmem>>, vector<1x32x128xbf16>
    %155 = vector.shape_cast %154 : vector<1x32x128xbf16> to vector<32x128xbf16>
    %cst_92 = arith.constant dense<0.000000e+00> : vector<16x128xf32>
    %156 = tpu.matmul %153, %155, %cst_92 {dimension_numbers = #tpu.dot_dimension_numbers<[1], [0], [0], [1], [0, 0, 1, 1], [], []>} : vector<16x32xbf16>, vector<32x128xbf16>, vector<16x128xf32> -> vector<16x128xf32>
    %157 = arith.addf %149, %156 : vector<16x128xf32>
    %158 = vector.extract_strided_slice %104 {offsets = [12, 0], sizes = [16, 32], strides = [1, 1]} : vector<32x32xf32> to vector<16x32xf32>
    %159 = arith.truncf %158 : vector<16x32xf32> to vector<16x32xbf16>
    %c7_93 = arith.constant 7 : index
    %c0_94 = arith.constant 0 : index
    %c0_95 = arith.constant 0 : index
    %160 = vector.load %arg6[%c7_93, %c0_94, %c0_95] : memref<9x32x128xbf16, #tpu.memory_space<vmem>>, vector<1x32x128xbf16>
    %161 = vector.shape_cast %160 : vector<1x32x128xbf16> to vector<32x128xbf16>
    %cst_96 = arith.constant dense<0.000000e+00> : vector<16x128xf32>
    %162 = tpu.matmul %159, %161, %cst_96 {dimension_numbers = #tpu.dot_dimension_numbers<[1], [0], [0], [1], [0, 0, 1, 1], [], []>} : vector<16x32xbf16>, vector<32x128xbf16>, vector<16x128xf32> -> vector<16x128xf32>
    %163 = arith.addf %157, %162 : vector<16x128xf32>
    %164 = vector.extract_strided_slice %104 {offsets = [13, 0], sizes = [16, 32], strides = [1, 1]} : vector<32x32xf32> to vector<16x32xf32>
    %165 = vector.broadcast %4 : vector<16x1xf32> to vector<16x32xf32>
    %166 = arith.mulf %164, %165 : vector<16x32xf32>
    %167 = arith.truncf %166 : vector<16x32xf32> to vector<16x32xbf16>
    %c8_97 = arith.constant 8 : index
    %c0_98 = arith.constant 0 : index
    %c0_99 = arith.constant 0 : index
    %168 = vector.load %arg6[%c8_97, %c0_98, %c0_99] : memref<9x32x128xbf16, #tpu.memory_space<vmem>>, vector<1x32x128xbf16>
    %169 = vector.shape_cast %168 : vector<1x32x128xbf16> to vector<32x128xbf16>
    %cst_100 = arith.constant dense<0.000000e+00> : vector<16x128xf32>
    %170 = tpu.matmul %167, %169, %cst_100 {dimension_numbers = #tpu.dot_dimension_numbers<[1], [0], [0], [1], [0, 0, 1, 1], [], []>} : vector<16x32xbf16>, vector<32x128xbf16>, vector<16x128xf32> -> vector<16x128xf32>
    %171 = arith.addf %163, %170 : vector<16x128xf32>
    %c0_101 = arith.constant 0 : index
    %c0_102 = arith.constant 0 : index
    %172 = vector.load %arg7[%c0_101, %c0_102] : memref<1x128xf32, #tpu.memory_space<vmem>>, vector<1x128xf32>
    %173 = vector.broadcast %172 : vector<1x128xf32> to vector<16x128xf32>
    %174 = arith.addf %171, %173 : vector<16x128xf32>
    %c0_103 = arith.constant 0 : index
    %c0_104 = arith.constant 0 : index
    %c0_105 = arith.constant 0 : index
    %175 = vector.load %arg10[%c0_103, %c0_104, %c0_105] : memref<1x16x128xf32, #tpu.memory_space<vmem>>, vector<1x16x128xf32>
    %176 = vector.shape_cast %175 : vector<1x16x128xf32> to vector<16x128xf32>
    %177 = vector.shape_cast %174 : vector<16x128xf32> to vector<1x16x128xf32>
    tpu.vector_store %arg10[%c0_103, %c0_104, %c0_105], %177 {strides = array<i32>} : memref<1x16x128xf32, #tpu.memory_space<vmem>>, vector<1x16x128xf32>,
    return
  }
  func.func @transform_0(%arg0: i32) -> (i32, i32, i32, i32) {
    %c0_i32 = arith.constant 0 : i32
    %c0_i32_0 = arith.constant 0 : i32
    %c0_i32_1 = arith.constant 0 : i32
    %c0_i32_2 = arith.constant 0 : i32
    return %arg0, %c0_i32, %c0_i32_0, %c0_i32_1 : i32, i32, i32, i32
  }
  func.func @transform_1(%arg0: i32) -> (i32, i32) {
    %c0_i32 = arith.constant 0 : i32
    %c0_i32_0 = arith.constant 0 : i32
    %c0_i32_1 = arith.constant 0 : i32
    return %c0_i32, %c0_i32_0 : i32, i32
  }
  func.func @transform_2(%arg0: i32) -> (i32, i32) {
    %c0_i32 = arith.constant 0 : i32
    %c0_i32_0 = arith.constant 0 : i32
    %c0_i32_1 = arith.constant 0 : i32
    return %c0_i32, %c0_i32_0 : i32, i32
  }
  func.func @transform_3(%arg0: i32) -> (i32, i32, i32) {
    %c0_i32 = arith.constant 0 : i32
    %c0_i32_0 = arith.constant 0 : i32
    %c0_i32_1 = arith.constant 0 : i32
    %c0_i32_2 = arith.constant 0 : i32
    return %c0_i32, %c0_i32_0, %c0_i32_1 : i32, i32, i32
  }
  func.func @transform_4(%arg0: i32) -> (i32, i32) {
    %c0_i32 = arith.constant 0 : i32
    %c0_i32_0 = arith.constant 0 : i32
    %c0_i32_1 = arith.constant 0 : i32
    return %c0_i32, %c0_i32_0 : i32, i32
  }
  func.func @transform_5(%arg0: i32) -> (i32, i32, i32) {
    %c0_i32 = arith.constant 0 : i32
    %c0_i32_0 = arith.constant 0 : i32
    %c0_i32_1 = arith.constant 0 : i32
    %c0_i32_2 = arith.constant 0 : i32
    return %c0_i32, %c0_i32_0, %c0_i32_1 : i32, i32, i32
  }
  func.func @transform_6(%arg0: i32) -> (i32, i32) {
    %c0_i32 = arith.constant 0 : i32
    %c0_i32_0 = arith.constant 0 : i32
    %c0_i32_1 = arith.constant 0 : i32
    return %c0_i32, %c0_i32_0 : i32, i32
  }
  func.func @transform_7(%arg0: i32) -> (i32, i32) {
    %c0_i32 = arith.constant 0 : i32
    %c0_i32_0 = arith.constant 0 : i32
    %c0_i32_1 = arith.constant 0 : i32
    return %c0_i32, %c0_i32_0 : i32, i32
  }
  func.func @transform_8(%arg0: i32) -> (i32, i32) {
    %c0_i32 = arith.constant 0 : i32
    %c0_i32_0 = arith.constant 0 : i32
    %c0_i32_1 = arith.constant 0 : i32
    return %c0_i32, %c0_i32_0 : i32, i32
  }
  func.func @transform_9(%arg0: i32) -> (i32, i32, i32) {
    %c0_i32 = arith.constant 0 : i32
    %c0_i32_0 = arith.constant 0 : i32
    %c0_i32_1 = arith.constant 0 : i32
    return %arg0, %c0_i32, %c0_i32_0 : i32, i32, i32
  }
}

</mosaic_0001>

<bundles_post_ra>
// kernel: vitaev2_forward.1
= control target key start
LH: loop header
LB: loop body
LE: loop exit
PB: predicated region body
PF: predicated region fallthrough
CT: control target
= control target key end

     0   :  { %14 = vsyncpa [#allocation3], 0  ;;  %s2952_s0 = inlined_call_operand.vmem [shape: bf16[2,4,16,32], index: 0, kind: input, shape index: {}]   ;;  %s2953_s1 = inlined_call_operand.vmem [shape: bf16[32,16], index: 1, kind: input, shape index: {}]   ;;  %s2954_s2 = inlined_call_operand.vmem [shape: f32[1,16], index: 2, kind: input, shape index: {}]   ;;  %s2955_s3 = inlined_call_operand.vmem [shape: bf16[9,16,32], index: 3, kind: input, shape index: {}]   ;;  %s2956_s4 = inlined_call_operand.vmem [shape: f32[1,32], index: 4, kind: input, shape index: {}]   ;;  %s2957_s5 = inlined_call_operand.vmem [shape: bf16[9,32,128], index: 5, kind: input, shape index: {}]   ;;  %s2958_s6 = inlined_call_operand.vmem [shape: f32[1,128], index: 6, kind: input, shape index: {}]   ;;  %s2959_s7 = inlined_call_operand.vmem [shape: f32[16,1], index: 7, kind: input, shape index: {}]   ;;  %s2960_s8 = inlined_call_operand.vmem [shape: f32[16,1], index: 8, kind: input, shape index: {}]   ;;  %s2961_s9 = inlined_call_operand.hbm [shape: f32[2,16,128], index: 9, kind: output, shape index: {}]  }
   0x1   :  { %16 = vsyncpa [#allocation3 + $0x1], 0  ;;  %s2539_s30 = smov 0   ;;  %s2541_s10 = smov 0  }
   0x2   :  { %s2543_s11 = smov 0   ;;  %s2545_s12 = smov 0  }
   0x3 LB: > { %s2560_s13 = sadd.s32 4294967295, %s2480_s12   ;;  %s1997_s14 = sadd.s32 4294967294, %s2480_s12   ;;  %s2480_s12 = sphi %s2545_s12, %s2967_s12   ;;  %s2476_s11 = sphi %s2543_s11, %s2966_s11   ;;  %s2472_s10 = sphi %s2541_s10, %s2965_s10   ;;  %s2468_s30 = sphi %s2539_s30, %s2964_s30  }
   0x4   : > { %s2564_s15 = sadd.s32 1, %s2480_s12   ;;  %s223_s16 = sadd.s32 1, %s2476_s11 }
   0x5   : > { %s220_s17 = ssub.s32 %s2480_s12, %s2564_s15  ;;  %p233_p0 = scmp.ne.s32.totalorder %s2476_s11, %s2472_s10 }
   0x6   : > { %p221_p1 = scmp.eq.s32.totalorder %s220_s17, 0  ;;  %p234_p2 = scmp.eq.s32.totalorder %s2560_s13, 1 }
   0x7   : > { %p239_p3 = scmp.ne.s32.totalorder %s2472_s10, %s2468_s30  ;;  %p240_p4 = scmp.eq.s32.totalorder %s1997_s14, 1 }
   0x8   : > { %s2575_s18 = scalar_select %p221_p1, %s2476_s11, %s223_s16  }
   0x9   : > { %p2577_p5 = por %p234_p2, %p233_p0  ;;  %p2581_p6 = por %p240_p4, %p239_p3 }
   0xa   : > { %p2000_p7 = scmp.ge.s32.totalorder %s2480_s12, 1  ;;  %p290_p8 = scmp.lt.s32.totalorder %s2480_s12, 3 }
   0xc   : > { %p291_p9 = pnand %p2000_p7, %p290_p8 }
   0xd   : > { %v2385_v0 = vld [vmem:[%s2953_s1] sm:$0xff] (!%p291_p9)   ;;  %v2482_v1 = vmov (!%p291_p9), 0.0   ;;  %v2386_v2 = vld [vmem:[%s2953_s1 + $0x8] sm:$0xff] (!%p291_p9)   ;;  %p326_p10 = scmp.lt.s32.totalorder (!%p291_p9), %s2560_s13, 1  ;;  %vm2483_vm0 = vmmov (!%p291_p9), 0   ;;  %v2484_v4 = vmov (!%p291_p9), 0  }
   0xe   : > { %294 = sbr.rel (%p291_p9) target bundleno = 783 (0x30f), region = 56  ;;  %2180 = vmatprep.subr.bf16.mxu0 (!%p291_p9), %v2482_v1  ;;  %2188 = vmatprep.subr.bf16.mxu1 (!%p291_p9), %v2482_v1  ;;  %v338_v3 = vld [vmem:[%s2959_s7] sm:$0xff] (!%p291_p9)  ;;  %vm367_vm1 = vcmask (!%p291_p9), 261120   ;;  %v339_v7 = vld [vmem:[%s2959_s7 + $0x8] sm:$0xff] (!%p291_p9)  ;;  %vm790_vm2 = vcmask (!%p291_p9), 1046528   ;;  %vm584_vm3 = vcmask (!%p291_p9), 1042432  }
   0xf   : > { %2181 = vmatpush3.bf16.msra.mxu0 (!%p291_p9), %v2385_v0  ;;  %2189 = vmatpush3.bf16.msra.mxu1 (!%p291_p9), %v2385_v0  ;;  %v2391_v10 = vld [vmem:[%s2955_s3 + $0x8] sm:$0xff] (!%p291_p9)   ;;  %v2392_v11 = vld [vmem:[%s2955_s3] sm:$0xff] (!%p291_p9)   ;;  %vm805_vm4 = vsmask.f32 (!%p291_p9), 4352  ;;  %vm605_vm5 = vcmask (!%p291_p9), 1045504   ;;  %vm615_vm6 = vcmask (!%p291_p9), 130048  }
  0x10   : > { %2182 = vmatprep.subr.bf16.mxu0 (!%p291_p9), %v2482_v1  ;;  %2190 = vmatprep.subr.bf16.mxu1 (!%p291_p9), %v2482_v1  ;;  %v340_v12 = vld [vmem:[%s2960_s8] sm:$0xff] (!%p291_p9)  ;;  %v341_v13 = vld [vmem:[%s2960_s8 + $0x8] sm:$0xff] (!%p291_p9)  ;;  %vm660_vm7 = vsmask.f32 (!%p291_p9), 6400  ;;  %vm1342_vm8 = vcmask (!%p291_p9), 1044480   ;;  %vm1583_vm9 = vcmask (!%p291_p9), 1040384  }
  0x11   : > { %2184 = vmatprep.mubr.msk.bf16.mxu0 (!%p291_p9), %vm2483_vm0, %v2482_v1  ;;  %2192 = vmatprep.mubr.msk.bf16.mxu1 (!%p291_p9), %vm2483_vm0, %v2482_v1  ;;  %v2004_v16 = vld [vmem:[%s2954_s2] ss:$0 sm:$0xff] (!%p291_p9)  ;;  %vm1359_vm10 = vsmask.f32 (!%p291_p9), 5376  ;;  %vm1600_vm11 = vsmask.f32 (!%p291_p9), 7424 }
  0x12   : > { %2383 = vset.pattern.permute.xlu0 (!%p291_p9), %v2484_v4  ;;  %2384 = vset.pattern.permute.xlu1 (!%p291_p9), %v2484_v4  ;;  %s323_s24 = sand.u32 (!%p291_p9), 1, %s2472_s10   ;;  %s2122_s14 = sshll.u32 (!%p291_p9), %s2560_s13, 8 }
  0x13   : > { %2183 = vmatpush3.bf16.msra.mxu0 (!%p291_p9), %v2386_v2  ;;  %2191 = vmatpush3.bf16.msra.mxu1 (!%p291_p9), %v2386_v2  ;;  %s2909_s21 = scalar_lea.hbm (!%p291_p9), %s2961_s9, %s2122_s14  ;;  %s2911_s22 = scalar_lea.sflag (!%p291_p9), [#allocation3], %s323_s24 }
  0x14   : > { %2196 = vmatprep.subr.bf16.mxu0 (!%p291_p9), %v2482_v1  ;;  %2204 = vmatprep.subr.bf16.mxu1 (!%p291_p9), %v2482_v1 }
  0x15   : > { %s327_s25 = scalar_select %p326_p10, %s2560_s13, 1  ;;  %578 = vperm.xlu0 %2383, %v338_v3   ;;  %1336 = vperm.xlu1 %2384, %v340_v12  }
  0x16   : > { %s2486_s13 = smov [#allocation2]  }
  0x17   : > { %s2121_s28 = sshll.u32 %s327_s25, 5  ;;  %s2001_s25 = sshll.u32 %s323_s24, 4 }
  0x18   : > { %s330_s16 = scalar_lea.vmem %s2952_s0, %s2121_s28  ;;  %s325_s28 = scalar_lea.vmem [#allocation2], %s2001_s25 }
  0x19   : > { %v2387_v5 = vld [vmem:[%s330_s16] sm:$0xff]   ;;  %v2388_v6 = vld [vmem:[%s330_s16 + $0x8] sm:$0xff]   ;;  %v2389_v8 = vld [vmem:[%s330_s16 + $0x10] sm:$0xff]   ;;  %582 = vperm.xlu0 %2383, %v339_v7   ;;  %1340 = vperm.xlu1 %2384, %v341_v13   ;;  %s1935_s29 = sshll.u32 %s325_s28, 4  ;;  %s2422_s25 = sshll.u32 %s2486_s13, 4  ;;  %s2904_s29 = int_to_ptr.vmem [resolvable:$true] %s1935_s29  ;;  %s2423_s25 = int_to_ptr.vmem [resolvable:$false] %s2422_s25 }
  0x1a   : > { %2185 = vmatmul.mubr.msk.bf16.vlgmr.msra.gmra.mrb[0].mxu0 %vm367_vm1, %v2387_v5  ;;  %2193 = vmatmul.mubr.msk.bf16.vlgmr.msra.gmra.mrb[0].mxu1 %vm367_vm1, %v2388_v6  ;;  %v2390_v9 = vld [vmem:[%s330_s16 + $0x18] sm:$0xff]   ;;  %s2418_s23 = scalar_lea.vmem %s2904_s29, 256  ;;  %s2424_s26 = scalar_lea.vmem %s2423_s25, 512 }
  0x1b   : > { %2197 = vmatpush3.bf16.msra.mxu0 %v2385_v0  ;;  %2205 = vmatpush3.bf16.msra.mxu1 %v2385_v0  ;;  %p2419_p11 = scmp.ne.s32.totalorder %s2904_s29, %s2418_s23  ;;  %p2425_p0 = scmp.lt.s32.totalorder %s2904_s29, %s2423_s25 }
  0x1c   : > { %2198 = vmatprep.subr.bf16.mxu0 %v2482_v1  ;;  %2206 = vmatprep.subr.bf16.mxu1 %v2482_v1  ;;  %p2426_p1 = scmp.lt.s32.totalorder %s2424_s26, %s2418_s23 }
  0x1d   : > { %2200 = vmatprep.mubr.msk.bf16.mxu0 %vm2483_vm0, %v2482_v1  ;;  %2208 = vmatprep.mubr.msk.bf16.mxu1 %vm2483_vm0, %v2482_v1  ;;  %p2420_p12 = pnand %p2419_p11, %p2577_p5 }
  0x1e   : > { %p2427_p2 = por %p2426_p1, %p2425_p0 }
  0x1f   : > { %2199 = vmatpush3.bf16.msra.mxu0 %v2386_v2  ;;  %2207 = vmatpush3.bf16.msra.mxu1 %v2386_v2  ;;  %p2421_p13 = pneg %p2420_p12 }
  0x20   : > { %2212 = vmatprep.subr.bf16.mxu0 %v2482_v1  ;;  %2218 = vmatprep.subr.bf16.mxu1 %v2482_v1 }
  0x21   : > { %p2428_p3 = pnand %p2427_p2, %p2421_p13 }
  0x22   : > { %2201 = vmatmul.mubr.msk.bf16.vlgmr.msra.gmra.mrb[4].mxu0 %vm367_vm1, %v2389_v8  ;;  %2209 = vmatmul.mubr.msk.bf16.vlgmr.msra.gmra.mrb[4].mxu1 %vm367_vm1, %v2390_v9 }
  0x23   : > { %2214 = vmatprep.mubr.msk.bf16.mxu0 %vm2483_vm0, %v2482_v1  ;;  %2220 = vmatprep.mubr.msk.bf16.mxu1 %vm2483_vm0, %v2482_v1 }
  0x24   : > { %2213 = vmatpush3.bf16.msra.mxu0 %v2391_v10  ;;  %2219 = vmatpush3.bf16.msra.mxu1 %v2392_v11 }
  0x25   : > { %2224 = vmatprep.subr.bf16.mxu0 %v2482_v1  ;;  %2230 = vmatprep.subr.bf16.mxu1 %v2482_v1 }
  0x94   : > { %v579_v14 = vpop.permute.xlu0 %578 }
  0x95   : > { %v791_v17 = vrot.slane %v579_v14, 1  ;;  %v2655_v38 = vrot.slane %v579_v14, 5 }
  0x97   : > { %v2652_v30 = vmul.f32 0.0, %v791_v17  ;;  %v2673_v5 = vmul.f32 0.0, %v2655_v38 }
  0x98   : > { %v583_v15 = vpop.permute.xlu0 %582 }
  0x99   : > { %v2647_v18 = vrot.slane %v583_v15, 1  ;;  %v2657_v39 = vrot.slane %v583_v15, 5 }
  0x9b   : > { %v2650_v26 = vsel %vm790_vm2, %v791_v17, %v2647_v18  ;;  %v2667_v54 = vsel %vm584_vm3, %v2655_v38, %v2657_v39 }
  0xed   : > { %v405_v19 = vpop.f32.mrb[0].mxu0  ;;  %v459_v21 = vpop.f32.mrb[0].mxu1 }
  0xee   : > { %v406_v20 = vadd.f32 %v2004_v16, %v405_v19  ;;  %v2186_v22 = vpop.f32.mrb[1].mxu0  ;;  %v460_v23 = vadd.f32 %v2004_v16, %v459_v21  ;;  %v2194_v24 = vpop.f32.mrb[1].mxu1 }
  0xef   : > { %v408_v25 = vpop.f32.mrb[2].mxu0  ;;  %v462_v28 = vpop.f32.mrb[2].mxu1 }
  0xf0   : > { %v409_v27 = vadd.f32 %v2004_v16, %v408_v25  ;;  %v2187_v29 = vpop.f32.mrb[3].mxu0  ;;  %v466_v31 = vmax.f32 %v460_v23, 0.0  ;;  %v463_v32 = vadd.f32 %v2004_v16, %v462_v28  ;;  %v2195_v33 = vpop.f32.mrb[3].mxu1  ;;  %v412_v34 = vmax.f32 %v406_v20, 0.0  ;;  %v2393_v20 = vld [vmem:[%s2955_s3 + $0x10] sm:$0xff]  }
  0xf2   : > { %v413_v35 = vmax.f32 %v409_v27, 0.0  ;;  %v798_v36 = vmul.f32 %v2650_v26, %v466_v31  ;;  %v467_v37 = vmax.f32 %v463_v32, 0.0 }
  0xf4   : > { %v2659_v40 = vpack.c.bf16 %v413_v35, %v412_v34  ;;  %v800_v41 = vpack.c.bf16 %v798_v36, %v2652_v30  ;;  %v799_v42 = vmul.f32 %v2647_v18, %v467_v37  ;;  %v2663_v43 = vpack.c.bf16 %v467_v37, %v466_v31 }
  0xf5   : > { %v513_v44 = vpop.f32.mrb[4].mxu0  ;;  %v567_v46 = vpop.f32.mrb[4].mxu1 }
  0xf6   : > { %v514_v45 = vadd.f32 %v2004_v16, %v513_v44  ;;  %v2202_v47 = vpop.f32.mrb[5].mxu0  ;;  %v801_v48 = vpack.c.bf16 %v799_v42, %v799_v42  ;;  %v568_v49 = vadd.f32 %v2004_v16, %v567_v46  ;;  %v2210_v50 = vpop.f32.mrb[5].mxu1  ;;  %v807_v52 = vshrl.u32 %v800_v41, 16 }
  0xf7   : > { %v516_v51 = vpop.f32.mrb[6].mxu0  ;;  %v810_v53 = vshll.u32 %v800_v41, 16  ;;  %v570_v57 = vpop.f32.mrb[6].mxu1 }
  0xf8   : > { %v520_v55 = vmax.f32 %v514_v45, 0.0  ;;  %v517_v56 = vadd.f32 %v2004_v16, %v516_v51  ;;  %v2203_v58 = vpop.f32.mrb[7].mxu0  ;;  %v815_v59 = vshrl.u32 %v801_v48, 16  ;;  %v818_v60 = vshll.u32 %v801_v48, 16  ;;  %v2211_v63 = vpop.f32.mrb[7].mxu1 }
  0xf9   : > { %v2669_v61 = vmax.f32 %v568_v49, 0.0  ;;  %v571_v62 = vadd.f32 %v2004_v16, %v570_v57  ;;  %v809_v3 = vrot.slane %v807_v52, 3  ;;  %v812_v4 = vrot.slane %v810_v53, 4 }
  0xfa   : > { %v598_v0 = vpack.c.bf16 %v520_v55, %v2482_v1  ;;  %v521_v2 = vmax.f32 %v517_v56, 0.0  ;;  %v817_v6 = vrot.slane %v815_v59, 3  ;;  %v820_v7 = vrot.slane %v818_v60, 4  ;;  %v2395_v56 = vld [vmem:[%s2955_s3 + $0x20] sm:$0xff]   ;;  %v2394_v59 = vld [vmem:[%s2955_s3 + $0x18] sm:$0xff]  }
  0xfb   : > { %v592_v8 = vmul.f32 %v2667_v54, %v2669_v61  ;;  %v987_v9 = vmul.f32 %v2650_v26, %v2669_v61  ;;  %v728_v14 = vpack.c.bf16 %v2669_v61, %v2482_v1  ;;  %v2684_v15 = vmax.f32 %v571_v62, 0.0 }
  0xfc   : > { %v599_v10 = vpack.c.bf16 %v521_v2, %v521_v2  ;;  %v2679_v11 = vpack.c.bf16 %v521_v2, %v520_v55  ;;  %v821_v12 = vor.u32 %v820_v7, %v817_v6  ;;  %v606_v16 = vrot.slane %v598_v0, 2  ;;  %v2397_v2 = vld [vmem:[%s2955_s3 + $0x30] sm:$0xff]   ;;  %v2402_v6 = vld [vmem:[%s2957_s5] sm:$0xff]   ;;  %v2404_v7 = vld [vmem:[%s2957_s5 + $0x8] sm:$0xff]  }
  0xfd   : > { %v594_v13 = vpack.c.bf16 %v592_v8, %v2673_v5  ;;  %v989_v17 = vpack.c.bf16 %v987_v9, %v2652_v30  ;;  %v813_v21 = vor.u32 %v812_v4, %v809_v3  ;;  %v593_v22 = vmul.f32 %v2657_v39, %v2684_v15  ;;  %v2396_v3 = vld [vmem:[%s2955_s3 + $0x28] sm:$0xff]   ;;  %v2399_v4 = vld [vmem:[%s2955_s3 + $0x40] sm:$0xff]  }
  0xfe   : > { %v607_v19 = vrot.slane %v599_v10, 2  ;;  %v729_v23 = vpack.c.bf16 %v2684_v15, %v2684_v15  ;;  %v988_v24 = vmul.f32 %v2647_v18, %v2684_v15  ;;  %v1119_v25 = vpack.c.bf16 %v2684_v15, %v2669_v61  ;;  %v2401_v61 = vld [vmem:[%s2957_s5 + $0x18] sm:$0xff]  }
  0xff   : > { %v662_v28 = vshrl.u32 %v594_v13, 16  ;;  %v665_v29 = vshll.u32 %v594_v13, 16  ;;  %v822_v31 = vsel %vm805_vm4, %v813_v21, %v821_v12  ;;  %v595_v32 = vpack.c.bf16 %v593_v22, %v593_v22 }
 0x100   : > { %v608_v27 = vsel %vm605_vm5, %v606_v16, %v607_v19  ;;  %v736_v33 = vrot.slane %v729_v23, 2  ;;  %v990_v34 = vpack.c.bf16 %v988_v24, %v988_v24  ;;  %v995_v35 = vshrl.u32 %v989_v17, 16 }
 0x101   : > { %2215 = vmatmul.mubr.msk.bf16.vlgmr.msra.gmra.mrb[8].mxu0 %vm615_vm6, %v608_v27  ;;  %v735_v36 = vrot.slane %v728_v14, 2  ;;  %v664_v37 = vrot.slane %v662_v28, 1  ;;  %v667_v41 = vrot.slane %v665_v29, 2  ;;  %v998_v42 = vshll.u32 %v989_v17, 16 }
 0x102   : > { %2225 = vmatpush3.bf16.msra.mxu0 %v2393_v20  ;;  %2226 = vmatprep.mubr.msk.bf16.mxu0 %vm2483_vm0, %v2482_v1  ;;  %v670_v44 = vshrl.u32 %v595_v32, 16  ;;  %v673_v45 = vshll.u32 %v595_v32, 16  ;;  %v1003_v46 = vshrl.u32 %v990_v34, 16  ;;  %v1006_v47 = vshll.u32 %v990_v34, 16 }
 0x103   : > { %2236 = vmatprep.subr.bf16.mxu0 %v2482_v1  ;;  %v737_v48 = vsel %vm605_vm5, %v735_v36, %v736_v33  ;;  %v997_v49 = vrot.slane %v995_v35, 3  ;;  %v1000_v50 = vrot.slane %v998_v42, 4  ;;  %v668_v57 = vor.u32 %v667_v41, %v664_v37 }
 0x104   : > { %v672_v51 = vrot.slane %v670_v44, 1  ;;  %v675_v52 = vrot.slane %v673_v45, 2  ;;  %v1005_v53 = vrot.slane %v1003_v46, 3  ;;  %v1008_v55 = vrot.slane %v1006_v47, 4  ;;  %v1337_v44 = vpop.permute.xlu1 %1336 }
 0x105   : > { %v1001_v60 = vor.u32 %v1000_v50, %v997_v49 }
 0x106   : > { %v676_v58 = vor.u32 %v675_v52, %v672_v51  ;;  %v1009_v62 = vor.u32 %v1008_v55, %v1005_v53 }
 0x108   : > { %v677_v63 = vsel %vm660_vm7, %v668_v57, %v676_v58  ;;  %v1010_v0 = vsel %vm805_vm4, %v1001_v60, %v1009_v62  ;;  %v2777_v58 = vpop.permute.xlu1 %1340 }
 0x109   : > { %2227 = vmatmul.mubr.msk.bf16.vlgmr.msra.gmra.mrb[12].mxu0 %vm615_vm6, %v737_v48  ;;  %2221 = vmatmul.mubr.msk.bf16.vlgmr.msra.gmra.mrb[8].mxu1 %vm615_vm6, %v677_v63 }
 0x10a   : > { %2237 = vmatpush3.bf16.msra.mxu0 %v2395_v56  ;;  %2231 = vmatpush3.bf16.msra.mxu1 %v2394_v59 }
 0x10b   : > { %2232 = vmatprep.mubr.msk.bf16.mxu1 %vm2483_vm0, %v2482_v1  ;;  %2242 = vmatprep.subr.bf16.mxu1 %v2482_v1 }
 0x10c   : > { %2238 = vmatprep.mubr.msk.bf16.mxu0 %vm2483_vm0, %v2482_v1  ;;  %2248 = vmatprep.subr.bf16.mxu0 %v2482_v1 }
 0x111   : > { %2239 = vmatmul.mubr.msk.bf16.vlgmr.msra.gmra.mrb[16].mxu0 %vm615_vm6, %v2659_v40  ;;  %2233 = vmatmul.mubr.msk.bf16.vlgmr.msra.gmra.mrb[12].mxu1 %vm615_vm6, %v822_v31  ;;  %v2398_v40 = vld [vmem:[%s2955_s3 + $0x38] sm:$0xff]  }
 0x112   : > { %2249 = vmatpush3.bf16.msra.mxu0 %v2397_v2  ;;  %2243 = vmatpush3.bf16.msra.mxu1 %v2396_v3  ;;  %v1343_v2 = vrot.slane %v1337_v44, 3 }
 0x113   : > { %2244 = vmatprep.mubr.msk.bf16.mxu1 %vm2483_vm0, %v2482_v1  ;;  %2254 = vmatprep.subr.bf16.mxu1 %v2482_v1 }
 0x114   : > { %2250 = vmatprep.mubr.msk.bf16.mxu0 %vm2483_vm0, %v2482_v1  ;;  %2260 = vmatprep.subr.bf16.mxu0 %v2482_v1 }
 0x119   : > { %2251 = vmatmul.mubr.msk.bf16.vlgmr.msra.gmra.mrb[20].mxu0 %vm615_vm6, %v1010_v0  ;;  %2245 = vmatmul.mubr.msk.bf16.vlgmr.msra.gmra.mrb[16].mxu1 %vm615_vm6, %v2663_v43  ;;  %v2400_v43 = vld [vmem:[%s2957_s5 + $0x10] sm:$0xff]  }
 0x11a   : > { %2261 = vmatpush3.bf16.msra.mxu0 %v2399_v4  ;;  %2255 = vmatpush3.bf16.msra.mxu1 %v2398_v40  ;;  %v2055_v4 = vld [vmem:[%s2956_s4] ss:$0 sm:$0xff]  ;;  %v2783_v40 = vrot.slane %v2777_v58, 3 }
 0x11b   : > { %2256 = vmatprep.mubr.msk.bf16.mxu1 %vm2483_vm0, %v2482_v1  ;;  %2262 = vmatprep.mubr.msk.bf16.mxu0 %vm2483_vm0, %v2482_v1 }
 0x11c   : > { %2266 = vmatprep.subr.bf16.mxu1 %v2482_v1  ;;  %2274 = vmatprep.subr.bf16.mxu0 %v2482_v1 }
 0x121   : > { %2263 = vmatmul.mubr.msk.bf16.vlgmr.msra.gmra.mrb[24].mxu0 %vm615_vm6, %v1119_v25  ;;  %2257 = vmatmul.mubr.msk.bf16.vlgmr.msra.gmra.mrb[20].mxu1 %vm615_vm6, %v2679_v11 }
 0x122   : > { %2278 = vmatprep.mubr.msk.bf16.mxu0 %vm2483_vm0, %v2482_v1  ;;  %2270 = vmatprep.mubr.msk.bf16.mxu1 %vm2483_vm0, %v2482_v1 }
 0x123   : > { %2267 = vmatpush3.bf16.msra.mxu1 %v2400_v43  ;;  %2275 = vmatpush3.bf16.msra.mxu0 %v2402_v6 }
 0x124   : > { %2268 = vmatprep.subr.bf16.mxu1 %v2482_v1  ;;  %2276 = vmatprep.subr.bf16.mxu0 %v2482_v1 }
 0x127   : > { %2269 = vmatpush3.bf16.msra.mxu1 %v2401_v61  ;;  %2277 = vmatpush3.bf16.msra.mxu0 %v2404_v7 }
 0x128   : > { %2282 = vmatprep.subr.bf16.mxu1 %v2482_v1  ;;  %2290 = vmatprep.subr.bf16.mxu0 %v2482_v1 }
 0x1d4   : > { %v653_v8 = vpop.f32.mrb[8].mxu0 }
 0x1d5   : > { %v2216_v9 = vpop.f32.mrb[9].mxu0 }
 0x1d6   : > { %v656_v10 = vpop.f32.mrb[10].mxu0 }
 0x1d7   : > { %v2217_v11 = vpop.f32.mrb[11].mxu0 }
 0x1d8   : > { %v1585_v11 = vrot.slane %v2777_v58, 7 }
 0x1dc   : > { %v781_v12 = vpop.f32.mrb[12].mxu0  ;;  %v721_v13 = vpop.f32.mrb[8].mxu1 }
 0x1dd   : > { %v2228_v14 = vpop.f32.mrb[13].mxu0  ;;  %v722_v15 = vadd.f32 %v721_v13, %v653_v8  ;;  %v2222_v16 = vpop.f32.mrb[9].mxu1  ;;  %v1584_v8 = vrot.slane %v1337_v44, 7  ;;  %v1349_v13 = vmul.f32 0.0, %v1343_v2 }
 0x1de   : > { %v784_v17 = vpop.f32.mrb[14].mxu0  ;;  %v724_v19 = vpop.f32.mrb[10].mxu1 }
 0x1df   : > { %v2229_v20 = vpop.f32.mrb[15].mxu0  ;;  %v725_v21 = vadd.f32 %v724_v19, %v656_v10  ;;  %v788_v22 = vadd.f32 %v781_v12, %v722_v15  ;;  %v2223_v23 = vpop.f32.mrb[11].mxu1  ;;  %v1345_v12 = vsel %vm1342_vm8, %v1343_v2, %v2783_v40  ;;  %v1586_v19 = vsel %vm1583_vm9, %v1584_v8, %v1585_v11 }
 0x1e1   : > { %v789_v24 = vadd.f32 %v784_v17, %v725_v21 }
 0x1e4   : > { %v922_v25 = vpop.f32.mrb[16].mxu0  ;;  %v866_v27 = vpop.f32.mrb[12].mxu1 }
 0x1e5   : > { %v2240_v28 = vpop.f32.mrb[17].mxu0  ;;  %v873_v29 = vadd.f32 %v866_v27, %v788_v22  ;;  %v2234_v31 = vpop.f32.mrb[13].mxu1 }
 0x1e6   : > { %v925_v32 = vpop.f32.mrb[18].mxu0  ;;  %v869_v33 = vpop.f32.mrb[14].mxu1 }
 0x1e7   : > { %v2241_v34 = vpop.f32.mrb[19].mxu0  ;;  %v874_v35 = vadd.f32 %v869_v33, %v789_v24  ;;  %v929_v36 = vadd.f32 %v922_v25, %v873_v29  ;;  %v2235_v37 = vpop.f32.mrb[15].mxu1 }
 0x1e9   : > { %v930_v41 = vadd.f32 %v925_v32, %v874_v35 }
 0x1ec   : > { %v1054_v42 = vpop.f32.mrb[20].mxu0  ;;  %v978_v45 = vpop.f32.mrb[16].mxu1 }
 0x1ed   : > { %v2252_v46 = vpop.f32.mrb[21].mxu0  ;;  %v985_v47 = vadd.f32 %v978_v45, %v929_v36  ;;  %v2246_v48 = vpop.f32.mrb[17].mxu1 }
 0x1ee   : > { %v1057_v49 = vpop.f32.mrb[22].mxu0  ;;  %v981_v50 = vpop.f32.mrb[18].mxu1 }
 0x1ef   : > { %v2253_v51 = vpop.f32.mrb[23].mxu0  ;;  %v986_v52 = vadd.f32 %v981_v50, %v930_v41  ;;  %v1061_v53 = vadd.f32 %v1054_v42, %v985_v47  ;;  %v2247_v55 = vpop.f32.mrb[19].mxu1  ;;  %v2403_v50 = vld [vmem:[%s2957_s5 + $0x20] sm:$0xff]  }
 0x1f1   : > { %v1062_v56 = vadd.f32 %v1057_v49, %v986_v52 }
 0x1f4   : > { %v1166_v57 = vpop.f32.mrb[24].mxu0  ;;  %v1110_v59 = vpop.f32.mrb[20].mxu1 }
 0x1f5   : > { %v2264_v60 = vpop.f32.mrb[25].mxu0  ;;  %v1117_v62 = vadd.f32 %v1110_v59, %v1061_v53  ;;  %v2258_v63 = vpop.f32.mrb[21].mxu1  ;;  %v2405_v59 = vld [vmem:[%s2957_s5 + $0x28] sm:$0xff]  }
 0x1f6   : > { %v1169_v0 = vpop.f32.mrb[26].mxu0  ;;  %v1113_v3 = vpop.f32.mrb[22].mxu1 }
 0x1f7   : > { %v2265_v43 = vpop.f32.mrb[27].mxu0  ;;  %v1118_v61 = vadd.f32 %v1113_v3, %v1062_v56  ;;  %v1173_v6 = vadd.f32 %v1166_v57, %v1117_v62  ;;  %v2259_v7 = vpop.f32.mrb[23].mxu1 }
 0x1f9   : > { %v1181_v9 = vadd.f32 %v2055_v4, %v1173_v6  ;;  %v1174_v10 = vadd.f32 %v1169_v0, %v1118_v61  ;;  %v1673_v6 = vmul.f32 0.0, %v2657_v39 }
 0x1fb   : > { %v1183_v14 = vmax.f32 %v1181_v9, 0.0  ;;  %v1182_v15 = vadd.f32 %v2055_v4, %v1174_v10 }
 0x1fd   : > { %v1184_v16 = vmax.f32 %v1182_v15, 0.0  ;;  %v1350_v17 = vmul.f32 %v1345_v12, %v1183_v14  ;;  %v1590_v20 = vmul.f32 %v1584_v8, %v1183_v14  ;;  %v1825_v21 = vmul.f32 %v1343_v2, %v1183_v14 }
 0x1fe   : > { %v1193_v22 = vpack.c.bf16 %v1183_v14, %v2482_v1  ;;  %v1185_v23 = vmul.f32 %v1183_v14, %v2667_v54 }
 0x1ff   : > { %v1351_v24 = vmul.f32 %v2783_v40, %v1184_v16  ;;  %v1352_v25 = vpack.c.bf16 %v1350_v17, %v1349_v13  ;;  %v1591_v27 = vmul.f32 %v1586_v19, %v1184_v16  ;;  %v1826_v28 = vmul.f32 %v1345_v12, %v1184_v16 }
 0x200   : > { %v1194_v29 = vpack.c.bf16 %v1184_v16, %v1184_v16  ;;  %v1202_v31 = vrot.slane %v1193_v22, 2  ;;  %v1186_v32 = vmul.f32 %v1184_v16, %v2657_v39  ;;  %v1187_v33 = vpack.c.bf16 %v1185_v23, %v2673_v5 }
 0x201   : > { %v1353_v34 = vpack.c.bf16 %v1351_v24, %v1351_v24  ;;  %v1361_v35 = vshrl.u32 %v1352_v25, 16  ;;  %v1364_v36 = vshll.u32 %v1352_v25, 16  ;;  %v2794_v37 = vpack.c.bf16 %v1591_v27, %v1590_v20 }
 0x202   : > { %v2796_v41 = vpack.c.bf16 %v1826_v28, %v1825_v21  ;;  %v1203_v42 = vrot.slane %v1194_v29, 2  ;;  %v1188_v44 = vpack.c.bf16 %v1186_v32, %v1186_v32  ;;  %v1262_v45 = vshrl.u32 %v1187_v33, 16 }
 0x203   : > { %v1363_v46 = vrot.slane %v1361_v35, 2  ;;  %v1366_v47 = vrot.slane %v1364_v36, 3  ;;  %v1369_v48 = vshrl.u32 %v1353_v34, 16  ;;  %v1372_v49 = vshll.u32 %v1353_v34, 16  ;;  %v2410_v35 = vld [vmem:[%s2957_s5 + $0x50] sm:$0xff]   ;;  %v2411_v36 = vld [vmem:[%s2957_s5 + $0x60] sm:$0xff]  }
 0x204   : > { %v1435_v5 = vmul.f32 %v1183_v14, %v2650_v26  ;;  %v1204_v53 = vsel %vm605_vm5, %v1202_v31, %v1203_v42  ;;  %v1264_v55 = vrot.slane %v1262_v45, 1  ;;  %v1265_v56 = vshll.u32 %v1187_v33, 16 }
 0x205   : > { %v1371_v51 = vrot.slane %v1369_v48, 2  ;;  %v1374_v52 = vrot.slane %v1372_v49, 3  ;;  %2271 = vmatmul.mubr.msk.bf16.vlgmr.msra.gmra.mrb[24].mxu1 %vm367_vm1, %v1204_v53  ;;  %v1270_v60 = vshrl.u32 %v1188_v44, 16  ;;  %v1273_v62 = vshll.u32 %v1188_v44, 16 }
 0x206   : > { %2283 = vmatpush3.bf16.msra.mxu1 %v2403_v50  ;;  %2286 = vmatprep.mubr.msk.bf16.mxu1 %vm2483_vm0, %v2482_v1  ;;  %v1367_v26 = vor.u32 %v1366_v47, %v1363_v46  ;;  %v1267_v63 = vrot.slane %v1265_v56, 2  ;;  %v1436_v0 = vmul.f32 %v1184_v16, %v2647_v18  ;;  %v1437_v2 = vpack.c.bf16 %v1435_v5, %v2652_v30  ;;  %v2406_v18 = vld [vmem:[%s2957_s5 + $0x30] sm:$0xff]   ;;  %v2407_v30 = vld [vmem:[%s2957_s5 + $0x40] sm:$0xff]   ;;  %v2412_v50 = vld [vmem:[%s2957_s5 + $0x58] sm:$0xff]  }
 0x207   : > { %v1375_v57 = vor.u32 %v1374_v52, %v1371_v51  ;;  %2284 = vmatprep.subr.bf16.mxu1 %v2482_v1  ;;  %v2812_v3 = vpack.c.bf16 %v1184_v16, %v1183_v14  ;;  %v1272_v4 = vrot.slane %v1270_v60, 1  ;;  %v1275_v43 = vrot.slane %v1273_v62, 2  ;;  %v2413_v5 = vld [vmem:[%s2957_s5 + $0x68] sm:$0xff]  }
 0x208   : > { %v1438_v7 = vpack.c.bf16 %v1436_v0, %v1436_v0  ;;  %v1445_v8 = vshrl.u32 %v1437_v2, 16  ;;  %v1448_v9 = vshll.u32 %v1437_v2, 16  ;;  %v1268_v10 = vor.u32 %v1267_v63, %v1264_v55 }
 0x209   : > { %v1376_v61 = vsel %vm1359_vm10, %v1367_v26, %v1375_v57  ;;  %v1276_v12 = vor.u32 %v1275_v43, %v1272_v4  ;;  %v1671_v13 = vmul.f32 %v1183_v14, %v2655_v38  ;;  %v1672_v15 = vmul.f32 %v1184_v16, %v2667_v54  ;;  %v2408_v54 = vld [vmem:[%s2957_s5 + $0x38] sm:$0xff]   ;;  %v2409_v14 = vld [vmem:[%s2957_s5 + $0x48] sm:$0xff]  }
 0x20a   : > { %2285 = vmatpush3.bf16.msra.mxu1 %v2405_v59  ;;  %v1447_v39 = vrot.slane %v1445_v8, 3  ;;  %v1450_v17 = vrot.slane %v1448_v9, 4  ;;  %v1453_v19 = vshrl.u32 %v1438_v7, 16  ;;  %v1456_v20 = vshll.u32 %v1438_v7, 16  ;;  %v2414_v59 = vld [vmem:[%s2957_s5 + $0x70] sm:$0xff]   ;;  %v2416_v43 = vld [vmem:[%s2957_s5 + $0x78] sm:$0xff]  }
 0x20b   : > { %2298 = vmatprep.subr.bf16.mxu1 %v2482_v1  ;;  %v1277_v21 = vsel %vm660_vm7, %v1268_v10, %v1276_v12  ;;  %v1674_v22 = vpack.c.bf16 %v1672_v15, %v1671_v13  ;;  %v1675_v23 = vpack.c.bf16 %v1673_v6, %v1673_v6  ;;  %v1592_v38 = vmul.f32 0.0, %v1585_v11 }
 0x20c   : > { %2279 = vmatmul.mubr.msk.bf16.vlgmr.msra.gmra.mrb[28].mxu0 %vm367_vm1, %v1277_v21  ;;  %v1455_v24 = vrot.slane %v1453_v19, 3  ;;  %v1458_v25 = vrot.slane %v1456_v20, 4  ;;  %v1451_v16 = vor.u32 %v1450_v17, %v1447_v39  ;;  %v1604_v28 = vshll.u32 %v2794_v37, 16 }
 0x20d   : > { %2287 = vmatmul.mubr.msk.bf16.vlgmr.msra.gmra.mrb[28].mxu1 %vm367_vm1, %v1376_v61  ;;  %2291 = vmatpush3.bf16.msra.mxu0 %v2406_v18  ;;  %v1682_v58 = vshrl.u32 %v1674_v22, 16  ;;  %v1685_v11 = vshll.u32 %v1674_v22, 16  ;;  %v1690_v29 = vshrl.u32 %v1675_v23, 16  ;;  %v1693_v32 = vshll.u32 %v1675_v23, 16  ;;  %v2417_v61 = vld [vmem:[%s2957_s5 + $0x88] sm:$0xff]  }
 0x20e   : > { %2299 = vmatpush3.bf16.msra.mxu1 %v2407_v30  ;;  %2292 = vmatprep.subr.bf16.mxu0 %v2482_v1  ;;  %v1459_v27 = vor.u32 %v1458_v25, %v1455_v24  ;;  %v1594_v33 = vpack.c.bf16 %v1592_v38, %v1592_v38  ;;  %v1827_v34 = vmul.f32 0.0, %v2783_v40  ;;  %v1606_v42 = vrot.slane %v1604_v28, 1 }
 0x20f   : > { %2300 = vmatprep.subr.bf16.mxu1 %v2482_v1  ;;  %2294 = vmatprep.mubr.msk.bf16.mxu0 %vm2483_vm0, %v2482_v1  ;;  %v1684_v44 = vrot.slane %v1682_v58, 1  ;;  %v1687_v45 = vrot.slane %v1685_v11, 2  ;;  %v1692_v46 = vrot.slane %v1690_v29, 1  ;;  %v1695_v40 = vrot.slane %v1693_v32, 2 }
 0x210   : > { %2302 = vmatprep.mubr.msk.bf16.mxu1 %vm2483_vm0, %v2482_v1  ;;  %v1460_v31 = vsel %vm805_vm4, %v1451_v16, %v1459_v27  ;;  %v1602_v47 = vshrl.u32 %v2794_v37, 16  ;;  %v1609_v48 = vshll.u32 %v1594_v33, 16  ;;  %v1829_v49 = vpack.c.bf16 %v1827_v34, %v1827_v34 }
 0x211   : > { %2293 = vmatpush3.bf16.msra.mxu0 %v2408_v54  ;;  %v1836_v51 = vshrl.u32 %v2796_v41, 16  ;;  %v1839_v37 = vshll.u32 %v2796_v41, 16  ;;  %v1688_v53 = vor.u32 %v1687_v45, %v1684_v44  ;;  %v1696_v60 = vor.u32 %v1695_v40, %v1692_v46  ;;  %v2415_v41 = vld [vmem:[%s2957_s5 + $0x80] sm:$0xff]  }
 0x212   : > { %2301 = vmatpush3.bf16.msra.mxu1 %v2409_v14  ;;  %2306 = vmatprep.subr.bf16.mxu0 %v2482_v1  ;;  %v1607_v52 = vor.u32 %v1606_v42, %v1602_v47  ;;  %v1611_v55 = vrot.slane %v1609_v48, 1  ;;  %v1844_v56 = vshrl.u32 %v1829_v49, 16  ;;  %v1847_v57 = vshll.u32 %v1829_v49, 16 }
 0x213   : > { %2314 = vmatprep.subr.bf16.mxu1 %v2482_v1  ;;  %v1838_v62 = vrot.slane %v1836_v51, 2  ;;  %v1841_v26 = vrot.slane %v1839_v37, 3  ;;  %v1697_v0 = vsel %vm660_vm7, %v1688_v53, %v1696_v60  ;;  %v1764_v6 = vrot.slane %v2812_v3, 2 }
 0x214   : > { %2295 = vmatmul.mubr.msk.bf16.vlgmr.msra.gmra.mrb[32].mxu0 %vm367_vm1, %v1460_v31  ;;  %v1612_v63 = vsel %vm1600_vm11, %v1607_v52, %v1611_v55  ;;  %v1846_v2 = vrot.slane %v1844_v56, 2  ;;  %v1849_v4 = vrot.slane %v1847_v57, 3  ;;  %v2485_v7 = vmov 0.0|0.0  }
 0x215   : > { %2303 = vmatmul.mubr.msk.bf16.vlgmr.msra.gmra.mrb[32].mxu1 %vm367_vm1, %v2812_v3  ;;  %2307 = vmatpush3.bf16.msra.mxu0 %v2410_v35  ;;  %v1765_v8 = vrot.slane %v2485_v7, 2  ;;  %v1842_v9 = vor.u32 %v1841_v26, %v1838_v62 }
 0x216   : > { %2315 = vmatpush3.bf16.msra.mxu1 %v2411_v36  ;;  %2308 = vmatprep.subr.bf16.mxu0 %v2482_v1  ;;  %v1850_v10 = vor.u32 %v1849_v4, %v1846_v2 }
 0x217   : > { %2316 = vmatprep.subr.bf16.mxu1 %v2482_v1  ;;  %2310 = vmatprep.mubr.msk.bf16.mxu0 %vm2483_vm0, %v2482_v1  ;;  %v1766_v12 = vsel %vm605_vm5, %v1764_v6, %v1765_v8 }
 0x218   : > { %2318 = vmatprep.mubr.msk.bf16.mxu1 %vm2483_vm0, %v2482_v1  ;;  %v1851_v18 = vsel %vm1359_vm10, %v1842_v9, %v1850_v10 }
 0x219   : > { %2309 = vmatpush3.bf16.msra.mxu0 %v2412_v50 }
 0x21a   : > { %2317 = vmatpush3.bf16.msra.mxu1 %v2413_v5  ;;  %2322 = vmatprep.subr.bf16.mxu0 %v2482_v1 }
 0x21b   : > { %2330 = vmatprep.subr.bf16.mxu1 %v2482_v1 }
 0x21c   : > { %2311 = vmatmul.mubr.msk.bf16.vlgmr.msra.gmra.mrb[36].mxu0 %vm367_vm1, %v1612_v63 }
 0x21d   : > { %2319 = vmatmul.mubr.msk.bf16.vlgmr.msra.gmra.mrb[36].mxu1 %vm367_vm1, %v1697_v0  ;;  %2323 = vmatpush3.bf16.msra.mxu0 %v2414_v59  ;;  %v2115_v59 = vld [vmem:[%s2958_s6] ss:$0 sm:$0xff] }
 0x21e   : > { %2331 = vmatpush3.bf16.msra.mxu1 %v2415_v41  ;;  %2324 = vmatprep.subr.bf16.mxu0 %v2482_v1 }
 0x21f   : > { %2332 = vmatprep.subr.bf16.mxu1 %v2482_v1  ;;  %2326 = vmatprep.mubr.msk.bf16.mxu0 %vm2483_vm0, %v2482_v1 }
 0x220   : > { %2334 = vmatprep.mubr.msk.bf16.mxu1 %vm2483_vm0, %v2482_v1 }
 0x221   : > { %2325 = vmatpush3.bf16.msra.mxu0 %v2416_v43 }
 0x222   : > { %2333 = vmatpush3.bf16.msra.mxu1 %v2417_v61 }
 0x224   : > { %2327 = vmatmul.mubr.msk.bf16.vlgmr.msra.gmra.mrb[40].mxu0 %vm367_vm1, %v1766_v12 }
 0x225   : > { %2335 = vmatmul.mubr.msk.bf16.vlgmr.msra.gmra.mrb[40].mxu1 %vm367_vm1, %v1851_v18 }
 0x2d8   : > { %v1254_v30 = vpop.f32.mrb[24].mxu1 }
 0x2d9   : > { %v2272_v13 = vpop.f32.mrb[25].mxu1 }
 0x2da   : > { %v1257_v3 = vpop.f32.mrb[26].mxu1 }
 0x2db   : > { %v2273_v15 = vpop.f32.mrb[27].mxu1 }
 0x2df   : > { %v1327_v39 = vpop.f32.mrb[28].mxu0 }
 0x2e0   : > { %v1426_v17 = vpop.f32.mrb[28].mxu1  ;;  %v1328_v19 = vadd.f32 %v1327_v39, %v1254_v30  ;;  %v2280_v1 = vpop.f32.mrb[29].mxu0 }
 0x2e1   : > { %v2288_v20 = vpop.f32.mrb[29].mxu1  ;;  %v1330_v21 = vpop.f32.mrb[30].mxu0 }
 0x2e2   : > { %v1429_v22 = vpop.f32.mrb[30].mxu1  ;;  %v1331_v23 = vadd.f32 %v1330_v21, %v1257_v3  ;;  %v1433_v24 = vadd.f32 %v1426_v17, %v1328_v19  ;;  %v2281_v25 = vpop.f32.mrb[31].mxu0 }
 0x2e3   : > { %v2289_v38 = vpop.f32.mrb[31].mxu1 }
 0x2e4   : > { %v1434_v54 = vadd.f32 %v1429_v22, %v1331_v23 }
 0x2e7   : > { %v1510_v14 = vpop.f32.mrb[32].mxu0 }
 0x2e8   : > { %v1574_v16 = vpop.f32.mrb[32].mxu1  ;;  %v1517_v27 = vadd.f32 %v1510_v14, %v1433_v24  ;;  %v2296_v28 = vpop.f32.mrb[33].mxu0 }
 0x2e9   : > { %v2304_v58 = vpop.f32.mrb[33].mxu1  ;;  %v1513_v11 = vpop.f32.mrb[34].mxu0 }
 0x2ea   : > { %v1577_v29 = vpop.f32.mrb[34].mxu1  ;;  %v1518_v31 = vadd.f32 %v1513_v11, %v1434_v54  ;;  %v1581_v32 = vadd.f32 %v1574_v16, %v1517_v27  ;;  %v2297_v33 = vpop.f32.mrb[35].mxu0 }
 0x2eb   : > { %v2305_v34 = vpop.f32.mrb[35].mxu1 }
 0x2ec   : > { %v1582_v35 = vadd.f32 %v1577_v29, %v1518_v31 }
 0x2ef   : > { %v1662_v36 = vpop.f32.mrb[36].mxu0 }
 0x2f0   : > { %v1747_v42 = vpop.f32.mrb[36].mxu1  ;;  %v1669_v44 = vadd.f32 %v1662_v36, %v1581_v32  ;;  %v2312_v45 = vpop.f32.mrb[37].mxu0 }
 0x2f1   : > { %v2320_v46 = vpop.f32.mrb[37].mxu1  ;;  %v1665_v40 = vpop.f32.mrb[38].mxu0 }
 0x2f2   : > { %v1750_v47 = vpop.f32.mrb[38].mxu1  ;;  %v1670_v48 = vadd.f32 %v1665_v40, %v1582_v35  ;;  %v1754_v49 = vadd.f32 %v1747_v42, %v1669_v44  ;;  %v2313_v50 = vpop.f32.mrb[39].mxu0 }
 0x2f3   : > { %v2321_v5 = vpop.f32.mrb[39].mxu1 }
 0x2f4   : > { %v1755_v51 = vadd.f32 %v1750_v47, %v1670_v48 }
 0x2f7   : > { %v1816_v37 = vpop.f32.mrb[40].mxu0 }
 0x2f8   : > { %v1901_v52 = vpop.f32.mrb[40].mxu1  ;;  %v1823_v53 = vadd.f32 %v1816_v37, %v1754_v49  ;;  %v2328_v55 = vpop.f32.mrb[41].mxu0 }
 0x2f9   : > { %v2336_v56 = vpop.f32.mrb[41].mxu1  ;;  %v1819_v57 = vpop.f32.mrb[42].mxu0 }
 0x2fa   : > { %v1904_v60 = vpop.f32.mrb[42].mxu1  ;;  %v1824_v41 = vadd.f32 %v1819_v57, %v1755_v51  ;;  %v1908_v62 = vadd.f32 %v1901_v52, %v1823_v53  ;;  %v2329_v26 = vpop.f32.mrb[43].mxu0 }
 0x2fb   : > { %v2337_v63 = vpop.f32.mrb[43].mxu1 }
 0x2fc   : > { %v1917_v0 = vadd.f32 %v2115_v59, %v1908_v62  ;;  %v1909_v2 = vadd.f32 %v1904_v60, %v1824_v41 }
 0x2fe   : > { %1919 = vst [vmem:[%s325_s28] sm:$0xff] %v1917_v0  ;;  %v1918_v4 = vadd.f32 %v2115_v59, %v1909_v2 }
 0x300   : > { %1920 = vst [vmem:[%s325_s28 + $0x8] sm:$0xff] %v1918_v4 }
 0x301   : > { %2431 = shalt.err (!%p2428_p3)
}
 0x302   : > { %s2432_s24 = scalar_lea.hbm %s2909_s21, 256  ;;  %s2436_s14 = scalar_lea.hbm %s2961_s9, 512 }
 0x303   : > { %p2433_p4 = scmp.ne.s32.totalorder %s2909_s21, %s2432_s24  ;;  %p2437_p9 = scmp.lt.u32.totalorder %s2909_s21, %s2961_s9 }
 0x304   : > { %p2438_p10 = scmp.lt.u32.totalorder %s2436_s14, %s2432_s24  ;;  %p2440_p12 = scmp.lt.u32.totalorder %s2432_s24, %s2909_s21 }
 0x305   : > { %p2434_p7 = pnand %p2433_p4, %p2577_p5 }
 0x306   : > { %p2439_p11 = por %p2438_p10, %p2437_p9 }
 0x307   : > { %p2435_p8 = pneg %p2434_p7 }
 0x308   : > { %p2441_p13 = por %p2440_p12, %p2439_p11 }
 0x30a   : > { %p2442_p0 = pnand %p2441_p13, %p2435_p8 }
 0x30c   : > { %2445 = shalt.err (!%p2442_p0)
}
 0x30d   : > { %s2487_s23 = smov 128   ;;  %s2488_s13 = smov 8  }
 0x30e   : > { %2338 = dma.vmem_to_hbm [thread:$0]  (%p2577_p5), %s2904_s29, 256, %s2909_s21, %s2911_s22, %s2487_s23, %s2487_s23, %s2488_s13  }
 0x30f PF: > { %p2344_p1 = scmp.ge.s32.totalorder %s2480_s12, 2  ;;  %s1950_s25 = sand.u32 1, %s2468_s30  }
 0x310   : > { %s1951_s26 = scalar_lea.sflag [#allocation3], %s1950_s25 }
 0x311   : > { %p2341_p2 = pnand %p2344_p1, %p2581_p6 }
 0x313   : > { %2463 = dma.done.wait (!%p2341_p2), %s1951_s26, 256  }
 0x314   : > { %2465 = vsyncadd (!%p2341_p2), %s1951_s26, 4294967040  ;;  %p19_p3 = scmp.ge.s32.totalorder %s2564_s15, 4   ;;  %s2964_s30 = smov %s2472_s10 }
 0x315   : > { %s2965_s10 = smov %s2476_s11  ;;  %s2966_s11 = smov %s2575_s18 }
 0x316   : > { %s2967_s12 = smov %s2564_s15  ;;  %21 = sbr.rel (!%p19_p3) target bundleno = 3 (0x3), region = 110 }
 0x31d   :  { %1956 = vsyncpa [#allocation3], 1 }
 0x31e   :  { %1958 = vsyncpa [#allocation3 + $0x1], 1 }

</bundles_post_ra>
